<compile_context>
chip_gen: v7x
topology: tpu7x:2x2x1
jax: 0.10.0
libtpu: 0.0.40
codegen_flags: <defaults>
</compile_context>

<pallas_src>
import math

import jax
import jax.numpy as jnp
from jax import lax
from jax.experimental import pallas as pl
from jax.experimental.pallas import tpu as pltpu


_VMEM_LIMIT = 56 * 1024 * 1024   # below v7x's 64 MiB physical VMEM, above v5e/v6e defaults
_VMEM_BUDGET = 40 * 1024 * 1024  # tile-plan budget (headroom under _VMEM_LIMIT for temps)


# ----------------------------------------------------------------------------
# Kernel A: LayerNorm (affine folded into the operator) + bidirectional SSM
# conv (tiled Toeplitz, batched-over-H MXU matmul) + exact f32 D-skip + GELU.
# Activations live in (H, B, L) layout; grid = (batch blocks, l blocks, m blocks),
# with the m (reduction) axis innermost.
# ----------------------------------------------------------------------------
def s4_conv_kernel(x_ref, kmat_ref, cbias_ref, dgamma_ref, y_ref, z_ref, acc_ref):
    li = pl.program_id(1)
    mi = pl.program_id(2)

    @pl.when(mi == 0)
    def _init():
        acc_ref[...] = jnp.zeros_like(acc_ref)

    # LayerNorm over channels H, computed once per (batch block, m tile) during the
    # li == 0 sweep and cached in VMEM (bf16 MXU operand); later output tiles reuse the
    # cache instead of re-fetching x from HBM and re-normalizing.
    @pl.when(li == 0)
    def _layer_norm():
        xv = x_ref[0]                                            # (H, bt, lt) f32
        mu = jnp.mean(xv, axis=0, keepdims=True)                 # (1, bt, lt)
        var = jnp.mean((xv - mu) ** 2, axis=0, keepdims=True)
        z_ref[mi] = ((xv - mu) * lax.rsqrt(var + 1e-5)).astype(z_ref.dtype)

    # Toeplitz conv tile: per-channel (bt, lt) @ (lt, lt) MXU matmul, f32 accumulate.
    #   acc[h, b, l] += sum_m zhat[h, b, m] * (gamma[h] * K[h, l, m])
    z = z_ref[mi]                                                # (H, bt, lt) bf16
    acc_ref[...] += jnp.einsum("hbm,hml->hbl", z, kmat_ref[...],
                               preferred_element_type=jnp.float32)

    @pl.when(mi == pl.num_programs(2) - 1)
    def _finalize():
        # Exact D skip in f32 (D*gamma applied to the cached zhat at the output
        # positions) plus the folded beta terms, then GELU.
        zl = z_ref[li].astype(jnp.float32)                       # (H, bt, lt)
        pre = acc_ref[...] + dgamma_ref[...] * zl + cbias_ref[...][:, None, :]
        # TODO(synk): PyTorch nn.GELU defaults to exact erf; tanh approximation used.
        y_ref[...] = jax.nn.gelu(pre, approximate=True).astype(y_ref.dtype)


# ----------------------------------------------------------------------------
# Kernel B: position-wise output linear (H -> H) + bias + residual on 2-D
# (H, B*L) slabs -> plain (H,H)@(H,C_tile) MXU matmul, lane-dense store.
# ----------------------------------------------------------------------------
def s4_out_kernel(y_ref, x_ref, w_ref, b_ref, o_ref):
    y = y_ref[...]                                               # (H, ct) bf16
    o = jnp.dot(w_ref[...], y, preferred_element_type=jnp.float32)
    o_ref[...] = (o + b_ref[...] + x_ref[...]).astype(o_ref.dtype)


# ----------------------------------------------------------------------------
# Parameter setup (deterministic, plain-JAX glue)
# ----------------------------------------------------------------------------
def make_s4d_kernel(key, H, N, L):
    """Synthesize a bidirectional diagonal-SSM conv kernel k of shape (2, H, L)."""
    kd, kc = jax.random.split(key)
    log_dt = jax.random.uniform(kd, (H,), minval=math.log(1e-3),
                                maxval=math.log(1e-1))
    dt = jnp.exp(log_dt)                                         # (H,)
    n = N // 2
    A = -0.5 + 1j * jnp.pi * jnp.arange(n)                       # (n,) S4D-Lin poles
    Craw = jax.random.normal(kc, (2, H, n, 2))
    C = (Craw[..., 0] + 1j * Craw[..., 1]) * (0.5 ** 0.5)        # (2, H, n) complex
    dtA = dt[:, None] * A[None, :]                               # (H, n)
    Cc = C * (jnp.exp(dtA) - 1.0) / A                            # ZOH-style coeff
    vand = jnp.exp(dtA[:, :, None] * jnp.arange(L)[None, None, :])   # (H, n, L)
    k = 2.0 * jnp.real(jnp.einsum('chn,hnl->chl', Cc, vand))
    return k.astype(jnp.float32)                                 # (2, H, L)


def _toeplitz(kpad, L_valid):
    """(2, H, Lp) zero-padded kernels -> (H, Lp, Lp) Toeplitz [h, l, m].

    Rows/columns at padded positions (>= L_valid) are zeroed so the padded matmul
    and the folded beta*rowsum bias are exactly equivalent to the unpadded conv.
    """
    k0, k1 = kpad[0], kpad[1]                                    # (H, Lp) each
    _, Lp = k0.shape
    li = jnp.arange(Lp)[:, None]
    mi = jnp.arange(Lp)[None, :]
    diff = li - mi                                               # (Lp, Lp)
    causal = k0[:, jnp.clip(diff, 0, Lp - 1)]                    # (H, Lp, Lp)
    anticausal = k1[:, jnp.clip(-diff - 1, 0, Lp - 1)]           # (H, Lp, Lp)
    kmat = jnp.where(diff >= 0, causal, anticausal)
    valid = (li < L_valid) & (mi < L_valid)
    return jnp.where(valid[None], kmat, 0.0)


def _padded_len(L):
    # Pad to a lane-dense multiple of 128 (full-dim blocks are used when L <= 128).
    return L if L <= 128 else ((L + 127) // 128) * 128


def init_params(key, d_model, d_state, L):
    H = d_model
    Lp = _padded_len(L)
    keys = jax.random.split(key, 4)
    k = make_s4d_kernel(keys[0], H, d_state, L)                  # (2, H, L)
    kpad = jnp.pad(k, ((0, 0), (0, 0), (0, Lp - L)))
    K = _toeplitz(kpad, L)                                       # (H, Lp, Lp) [l, m]
    D = jax.random.normal(keys[1], (H,), jnp.float32)            # skip D
    gamma = jnp.ones((H,), jnp.float32)                          # LayerNorm defaults
    beta = jnp.zeros((H,), jnp.float32)
    # Fold the LayerNorm affine exactly:
    #   K (gamma*zhat + beta) + D (gamma*zhat + beta)
    #     = (gamma*K) zhat  +  (D*gamma) zhat  +  [beta*rowsum(K) + D*beta]
    cbias = beta[:, None] * jnp.sum(K, axis=2) + (D * beta)[:, None]      # (H, Lp)
    kmat_t = jnp.transpose(K * gamma[:, None, None], (0, 2, 1))           # [h, m, l]
    kmat_t = kmat_t.astype(jnp.bfloat16)                         # bf16 MXU operand
    dgamma = (D * gamma).reshape(H, 1, 1).astype(jnp.float32)    # exact f32 D skip
    W = (jax.random.normal(keys[2], (H, H), jnp.float32)
         * (1.0 / math.sqrt(H))).astype(jnp.bfloat16)            # output_linear weight
    bias = 0.02 * jax.random.normal(keys[3], (H, 1), jnp.float32)
    return dict(kmat_t=kmat_t, cbias=cbias, dgamma=dgamma, W=W, bias=bias)


# ----------------------------------------------------------------------------
# VMEM-aware tile selection
# ----------------------------------------------------------------------------
def _vmem_bytes_a(H, bt, lt, Lp):
    return (2 * H * bt * lt * 4        # x tile (double-buffered, f32)
            + H * bt * Lp * 2          # z cache (bf16, full padded length)
            + 2 * H * lt * lt * 2      # kmat tile (double-buffered, bf16)
            + 2 * H * lt * 4           # conv-bias tile
            + 2 * H * bt * lt * 2      # y output tile (double-buffered, bf16)
            + H * bt * lt * 4          # f32 accumulator
            + 3 * H * bt * lt * 4)     # headroom for in-kernel temporaries


def _choose_tiles(B, H, Lp):
    lt = Lp if Lp < 128 else 128
    bt = None
    for cand in (128, 64, 32, 16, 8):                # largest batch tile that fits VMEM
        if B % cand == 0 and _vmem_bytes_a(H, cand, lt, Lp) <= _VMEM_BUDGET:
            bt = cand
            break
    if bt is None:
        bt = 8 if (B % 8 == 0) else B                # tiny / odd batches: whole batch
    # v6e/v7x have a 256-wide MXU; use a 256 tile when it still fits the budget.
    if Lp % 256 == 0 and _vmem_bytes_a(H, bt, 256, Lp) <= _VMEM_BUDGET:
        lt = 256
    return bt, lt


def _choose_ct(C, H):
    for cand in (2048, 1024, 512, 256, 128):
        if C % cand == 0 and 20 * H * cand <= _VMEM_BUDGET:
            return cand
    return C


# ----------------------------------------------------------------------------
# Wrapper
# ----------------------------------------------------------------------------
def s4_layer_forward(x, params):
    B, H, L = x.shape
    kmat_t = params["kmat_t"]                        # (H, Lp, Lp) bf16, [h, m, l]
    cbias = params["cbias"]                          # (H, Lp) f32
    dgamma = params["dgamma"]                        # (H, 1, 1) f32
    W, bias = params["W"], params["bias"]            # (H, H) bf16, (H, 1) f32
    Lp = kmat_t.shape[-1]

    bt, lt = _choose_tiles(B, H, Lp)
    nb_b, nb_l, nb_m = B // bt, Lp // lt, Lp // lt

    xt = jnp.transpose(x, (1, 0, 2))                 # (H, B, L)
    xp = xt if Lp == L else jnp.pad(xt, ((0, 0), (0, 0), (0, Lp - L)))
    # m-block-major layout so the kernel indexes x and the z-cache by a leading axis.
    x4 = xp.reshape(H, B, nb_m, lt).transpose(2, 0, 1, 3)        # (nb_m, H, B, lt)

    def x_index(bi, li, mi):
        # x is only consumed during the li == 0 sweep (LayerNorm -> z cache); freeze the
        # block index afterwards so x is not re-fetched from HBM for li > 0.
        return (jnp.where(li == 0, mi, 0), 0, bi, 0)

    kmat_bytes = nb_b * H * Lp * Lp * 2
    y = pl.pallas_call(
        s4_conv_kernel,
        out_shape=jax.ShapeDtypeStruct((H, B, Lp), jnp.bfloat16),
        grid=(nb_b, nb_l, nb_m),
        in_specs=[
            pl.BlockSpec((1, H, bt, lt), x_index),                        # x
            pl.BlockSpec((H, lt, lt), lambda bi, li, mi: (0, mi, li)),    # kmat tile
            pl.BlockSpec((H, lt), lambda bi, li, mi: (0, li)),            # conv bias
            pl.BlockSpec((H, 1, 1), lambda bi, li, mi: (0, 0, 0)),        # D*gamma
        ],
        out_specs=pl.BlockSpec((H, bt, lt), lambda bi, li, mi: (0, bi, li)),
        scratch_shapes=[pltpu.VMEM((nb_m, H, bt, lt), jnp.bfloat16),      # z cache
                        pltpu.VMEM((H, bt, lt), jnp.float32)],            # accumulator
        compiler_params=pltpu.CompilerParams(
            # li must stay sequential ("arbitrary"): the z cache is filled during the
            # li == 0 sweep.  Megacore parallelism comes from the batch-block axis.
            dimension_semantics=("parallel", "arbitrary", "arbitrary"),
            vmem_limit_bytes=_VMEM_LIMIT),
        cost_estimate=pl.CostEstimate(
            flops=int(2 * B * H * Lp * Lp),
            transcendentals=int(B * H * Lp),
            bytes_accessed=int(kmat_bytes + H * B * Lp * 4 + H * B * Lp * 2)),
    )(x4, kmat_t, cbias, dgamma)

    if Lp != L:
        y = y[:, :, :L]

    # Output projection + bias + residual on a 2-D (H, B*L) slab.
    C = B * L
    ct = _choose_ct(C, H)
    y2 = y.reshape(H, C)
    x2 = xt.reshape(H, C)
    out2 = pl.pallas_call(
        s4_out_kernel,
        out_shape=jax.ShapeDtypeStruct((H, C), x.dtype),
        grid=(C // ct,),
        in_specs=[
            pl.BlockSpec((H, ct), lambda ci: (0, ci)),           # GELU'd conv output
            pl.BlockSpec((H, ct), lambda ci: (0, ci)),           # residual x
            pl.BlockSpec((H, H), lambda ci: (0, 0)),             # output linear weight
            pl.BlockSpec((H, 1), lambda ci: (0, 0)),             # output linear bias
        ],
        out_specs=pl.BlockSpec((H, ct), lambda ci: (0, ci)),
        compiler_params=pltpu.CompilerParams(
            dimension_semantics=("parallel",),
            vmem_limit_bytes=_VMEM_LIMIT),
        cost_estimate=pl.CostEstimate(
            flops=int(2 * H * H * C),
            transcendentals=0,
            bytes_accessed=int(H * C * (2 + 4 + 4) + H * H * 2)),
    )(y2, x2, W, bias)

    out = jnp.transpose(out2.reshape(H, B, L), (1, 0, 2))        # back to (B, H, L)
    # forward returns (x, None) like the PyTorch module
    return out, None


if __name__ == "__main__":
    B, d_model, L = 2, 16, 32
    d_state = 128  # fixed by the module

    key = jax.random.PRNGKey(0)
    kx, kp = jax.random.split(key)
    x = jax.random.normal(kx, (B, d_model, L), jnp.float32)      # (B, d_input, L)
    params = init_params(kp, d_model, d_state, L)

    fwd = jax.jit(s4_layer_forward)
    out, _ = fwd(x, params)
    out = jax.block_until_ready(out)

    assert out.shape == (B, d_model, L)
    assert bool(jnp.all(jnp.isfinite(out)))
    print("KERNEL_OK")
</pallas_src>

<mosaic_0001>
module attributes {stable_mosaic.version = 11 : i64} {
  func.func @s4_conv_kernel(%arg0: i32, %arg1: i32, %arg2: i32, %arg3: memref<1x16x2x32xf32, #tpu.memory_space<vmem>>, %arg4: memref<16x32x32xbf16, #tpu.memory_space<vmem>>, %arg5: memref<16x32xf32, #tpu.memory_space<vmem>>, %arg6: memref<16x1x1xf32, #tpu.memory_space<vmem>>, %arg7: memref<16x2x32xbf16, #tpu.memory_space<vmem>>, %arg8: memref<1x16x2x32xbf16, #tpu.memory_space<vmem>>, %arg9: memref<16x2x32xf32, #tpu.memory_space<vmem>>) attributes {dimension_semantics = [#tpu.dimension_semantics<parallel>, #tpu.dimension_semantics<arbitrary>, #tpu.dimension_semantics<arbitrary>], iteration_bounds = array<i64: 1, 1, 1>, scalar_prefetch = 0 : i64, scratch_operands = 2 : i64, tpu.core_type = #tpu.core_type<tc>, window_params = [{transform_indices = @transform_0, window_bounds = array<i64: 1, 16, 2, 32>}, {transform_indices = @transform_1, window_bounds = array<i64: 16, 32, 32>}, {transform_indices = @transform_2, window_bounds = array<i64: 16, 32>}, {pipeline_mode = #tpu.pipeline_mode<synchronous>, transform_indices = @transform_3, window_bounds = array<i64: 16, 1, 1>}, {transform_indices = @transform_4, window_bounds = array<i64: 16, 2, 32>}]} {
    %c0_i32 = arith.constant 0 : i32
    %0 = arith.cmpi eq, %arg2, %c0_i32 : i32
    %1 = arith.extui %0 : i1 to i32
    %c0_i32_0 = arith.constant 0 : i32
    %2 = arith.cmpi ne, %1, %c0_i32_0 : i32
    scf.if %2 {
      %cst_16 = arith.constant 0.000000e+00 : f32
      %17 = vector.broadcast %cst_16 : f32 to vector<16x2x32xf32>
      %c0_17 = arith.constant 0 : index
      %c0_18 = arith.constant 0 : index
      %c0_19 = arith.constant 0 : index
      %18 = vector.load %arg9[%c0_17, %c0_18, %c0_19] : memref<16x2x32xf32, #tpu.memory_space<vmem>>, vector<16x2x32xf32>
      tpu.vector_store %arg9[%c0_17, %c0_18, %c0_19], %17 {strides = array<i32>} : memref<16x2x32xf32, #tpu.memory_space<vmem>>, vector<16x2x32xf32>,
    } else {
    }
    %c0_i32_1 = arith.constant 0 : i32
    %3 = arith.cmpi eq, %arg1, %c0_i32_1 : i32
    %4 = arith.extui %3 : i1 to i32
    %c0_i32_2 = arith.constant 0 : i32
    %5 = arith.cmpi ne, %4, %c0_i32_2 : i32
    scf.if %5 {
      %c0_16 = arith.constant 0 : index
      %c0_17 = arith.constant 0 : index
      %c0_18 = arith.constant 0 : index
      %c0_19 = arith.constant 0 : index
      %17 = vector.load %arg3[%c0_16, %c0_17, %c0_18, %c0_19] : memref<1x16x2x32xf32, #tpu.memory_space<vmem>>, vector<1x16x2x32xf32>
      %18 = vector.shape_cast %17 : vector<1x16x2x32xf32> to vector<16x2x32xf32>
      %cst_20 = arith.constant dense<0.000000e+00> : vector<2x32xf32>
      %19 = vector.multi_reduction <add>, %18, %cst_20 [0] : vector<16x2x32xf32> to vector<2x32xf32>
      %20 = vector.shape_cast %19 : vector<2x32xf32> to vector<1x2x32xf32>
      %cst_21 = arith.constant 1.600000e+01 : f32
      %21 = vector.broadcast %cst_21 : f32 to vector<1x2x32xf32>
      %22 = arith.divf %20, %21 : vector<1x2x32xf32>
      %23 = vector.broadcast %22 : vector<1x2x32xf32> to vector<16x2x32xf32>
      %24 = arith.subf %18, %23 : vector<16x2x32xf32>
      %25 = arith.mulf %24, %24 : vector<16x2x32xf32>
      %cst_22 = arith.constant dense<0.000000e+00> : vector<2x32xf32>
      %26 = vector.multi_reduction <add>, %25, %cst_22 [0] : vector<16x2x32xf32> to vector<2x32xf32>
      %27 = vector.shape_cast %26 : vector<2x32xf32> to vector<1x2x32xf32>
      %cst_23 = arith.constant 1.600000e+01 : f32
      %28 = vector.broadcast %cst_23 : f32 to vector<1x2x32xf32>
      %29 = arith.divf %27, %28 : vector<1x2x32xf32>
      %30 = vector.broadcast %22 : vector<1x2x32xf32> to vector<16x2x32xf32>
      %31 = arith.subf %18, %30 : vector<16x2x32xf32>
      %cst_24 = arith.constant 9.99999974E-6 : f32
      %32 = vector.broadcast %cst_24 : f32 to vector<1x2x32xf32>
      %33 = arith.addf %29, %32 : vector<1x2x32xf32>
      %34 = math.rsqrt %33 : vector<1x2x32xf32>
      %35 = vector.broadcast %34 : vector<1x2x32xf32> to vector<16x2x32xf32>
      %36 = arith.mulf %31, %35 : vector<16x2x32xf32>
      %37 = arith.truncf %36 : vector<16x2x32xf32> to vector<16x2x32xbf16>
      %38 = arith.index_cast %arg2 : i32 to index
      %c0_25 = arith.constant 0 : index
      %c0_26 = arith.constant 0 : index
      %c0_27 = arith.constant 0 : index
      %39 = vector.load %arg8[%38, %c0_25, %c0_26, %c0_27] : memref<1x16x2x32xbf16, #tpu.memory_space<vmem>>, vector<1x16x2x32xbf16>
      %40 = vector.shape_cast %39 : vector<1x16x2x32xbf16> to vector<16x2x32xbf16>
      %41 = vector.shape_cast %37 : vector<16x2x32xbf16> to vector<1x16x2x32xbf16>
      tpu.vector_store %arg8[%38, %c0_25, %c0_26, %c0_27], %41 {strides = array<i32>} : memref<1x16x2x32xbf16, #tpu.memory_space<vmem>>, vector<1x16x2x32xbf16>,
    } else {
    }
    %6 = arith.index_cast %arg2 : i32 to index
    %c0 = arith.constant 0 : index
    %c0_3 = arith.constant 0 : index
    %c0_4 = arith.constant 0 : index
    %7 = vector.load %arg8[%6, %c0, %c0_3, %c0_4] : memref<1x16x2x32xbf16, #tpu.memory_space<vmem>>, vector<1x16x2x32xbf16>
    %8 = vector.shape_cast %7 : vector<1x16x2x32xbf16> to vector<16x2x32xbf16>
    %c0_5 = arith.constant 0 : index
    %c0_6 = arith.constant 0 : index
    %c0_7 = arith.constant 0 : index
    %9 = vector.load %arg9[%c0_5, %c0_6, %c0_7] : memref<16x2x32xf32, #tpu.memory_space<vmem>>, vector<16x2x32xf32>
    %c0_8 = arith.constant 0 : index
    %c0_9 = arith.constant 0 : index
    %c0_10 = arith.constant 0 : index
    %10 = vector.load %arg4[%c0_8, %c0_9, %c0_10] : memref<16x32x32xbf16, #tpu.memory_space<vmem>>, vector<16x32x32xbf16>
    "tpu.trace_start"() <{level = 10 : i32, message = "hbm,hml->hbl"}> : () -> ()
    %cst = arith.constant dense<0.000000e+00> : vector<16x2x32xf32>
    %11 = tpu.matmul %8, %10, %cst {dimension_numbers = #tpu.dot_dimension_numbers<[2], [1], [1], [2], [0, 0, 0, 1, 1, 2], [0], [0]>} : vector<16x2x32xbf16>, vector<16x32x32xbf16>, vector<16x2x32xf32> -> vector<16x2x32xf32>
    "tpu.trace_stop"() : () -> ()
    %12 = arith.addf %9, %11 : vector<16x2x32xf32>
    %c0_11 = arith.constant 0 : index
    %c0_12 = arith.constant 0 : index
    %c0_13 = arith.constant 0 : index
    %13 = vector.load %arg9[%c0_11, %c0_12, %c0_13] : memref<16x2x32xf32, #tpu.memory_space<vmem>>, vector<16x2x32xf32>
    tpu.vector_store %arg9[%c0_11, %c0_12, %c0_13], %12 {strides = array<i32>} : memref<16x2x32xf32, #tpu.memory_space<vmem>>, vector<16x2x32xf32>,
    %c0_i32_14 = arith.constant 0 : i32
    %14 = arith.cmpi eq, %arg2, %c0_i32_14 : i32
    %15 = arith.extui %14 : i1 to i32
    %c0_i32_15 = arith.constant 0 : i32
    %16 = arith.cmpi ne, %15, %c0_i32_15 : i32
    scf.if %16 {
      %17 = arith.index_cast %arg1 : i32 to index
      %c0_16 = arith.constant 0 : index
      %c0_17 = arith.constant 0 : index
      %c0_18 = arith.constant 0 : index
      %18 = vector.load %arg8[%17, %c0_16, %c0_17, %c0_18] : memref<1x16x2x32xbf16, #tpu.memory_space<vmem>>, vector<1x16x2x32xbf16>
      %19 = vector.shape_cast %18 : vector<1x16x2x32xbf16> to vector<16x2x32xbf16>
      %20 = arith.extf %19 : vector<16x2x32xbf16> to vector<16x2x32xf32>
      %c0_19 = arith.constant 0 : index
      %c0_20 = arith.constant 0 : index
      %c0_21 = arith.constant 0 : index
      %21 = vector.load %arg9[%c0_19, %c0_20, %c0_21] : memref<16x2x32xf32, #tpu.memory_space<vmem>>, vector<16x2x32xf32>
      %c0_22 = arith.constant 0 : index
      %c0_23 = arith.constant 0 : index
      %c0_24 = arith.constant 0 : index
      %22 = vector.load %arg6[%c0_22, %c0_23, %c0_24] : memref<16x1x1xf32, #tpu.memory_space<vmem>>, vector<16x1x1xf32>
      %23 = vector.broadcast %22 : vector<16x1x1xf32> to vector<16x2x32xf32>
      %24 = arith.mulf %23, %20 : vector<16x2x32xf32>
      %25 = arith.addf %21, %24 : vector<16x2x32xf32>
      %c0_25 = arith.constant 0 : index
      %c0_26 = arith.constant 0 : index
      %26 = vector.load %arg5[%c0_25, %c0_26] : memref<16x32xf32, #tpu.memory_space<vmem>>, vector<16x32xf32>
      %27 = vector.shape_cast %26 : vector<16x32xf32> to vector<16x1x32xf32>
      %28 = vector.broadcast %27 : vector<16x1x32xf32> to vector<16x2x32xf32>
      %29 = arith.addf %25, %28 : vector<16x2x32xf32>
      %30 = arith.mulf %29, %29 : vector<16x2x32xf32>
      %31 = arith.mulf %29, %30 : vector<16x2x32xf32>
      %cst_27 = arith.constant 4.471500e-02 : f32
      %32 = vector.broadcast %cst_27 : f32 to vector<16x2x32xf32>
      %33 = arith.mulf %32, %31 : vector<16x2x32xf32>
      %34 = arith.addf %29, %33 : vector<16x2x32xf32>
      %cst_28 = arith.constant 0.797884583 : f32
      %35 = vector.broadcast %cst_28 : f32 to vector<16x2x32xf32>
      %36 = arith.mulf %35, %34 : vector<16x2x32xf32>
      %37 = math.tanh %36 : vector<16x2x32xf32>
      %cst_29 = arith.constant 1.000000e+00 : f32
      %38 = vector.broadcast %cst_29 : f32 to vector<16x2x32xf32>
      %39 = arith.addf %38, %37 : vector<16x2x32xf32>
      %cst_30 = arith.constant 5.000000e-01 : f32
      %40 = vector.broadcast %cst_30 : f32 to vector<16x2x32xf32>
      %41 = arith.mulf %40, %39 : vector<16x2x32xf32>
      %42 = arith.mulf %29, %41 : vector<16x2x32xf32>
      %43 = arith.truncf %42 : vector<16x2x32xf32> to vector<16x2x32xbf16>
      %c0_31 = arith.constant 0 : index
      %c0_32 = arith.constant 0 : index
      %c0_33 = arith.constant 0 : index
      %44 = vector.load %arg7[%c0_31, %c0_32, %c0_33] : memref<16x2x32xbf16, #tpu.memory_space<vmem>>, vector<16x2x32xbf16>
      tpu.vector_store %arg7[%c0_31, %c0_32, %c0_33], %43 {strides = array<i32>} : memref<16x2x32xbf16, #tpu.memory_space<vmem>>, vector<16x2x32xbf16>,
    } else {
    }
    return
  }
  func.func @transform_0(%arg0: i32, %arg1: i32, %arg2: i32) -> (i32, i32, i32, i32) {
    %c0_i32 = arith.constant 0 : i32
    %0 = arith.cmpi eq, %arg1, %c0_i32 : i32
    %c0_i32_0 = arith.constant 0 : i32
    %1 = arith.select %0, %arg2, %c0_i32_0 : i32
    %c0_i32_1 = arith.constant 0 : i32
    %c0_i32_2 = arith.constant 0 : i32
    %c0_i32_3 = arith.constant 0 : i32
    return %1, %c0_i32_1, %arg0, %c0_i32_2 : i32, i32, i32, i32
  }
  func.func @transform_1(%arg0: i32, %arg1: i32, %arg2: i32) -> (i32, i32, i32) {
    %c0_i32 = arith.constant 0 : i32
    %c0_i32_0 = arith.constant 0 : i32
    return %c0_i32, %arg2, %arg1 : i32, i32, i32
  }
  func.func @transform_2(%arg0: i32, %arg1: i32, %arg2: i32) -> (i32, i32) {
    %c0_i32 = arith.constant 0 : i32
    %c0_i32_0 = arith.constant 0 : i32
    return %c0_i32, %arg1 : i32, i32
  }
  func.func @transform_3(%arg0: i32, %arg1: i32, %arg2: i32) -> (i32, i32, i32) {
    %c0_i32 = arith.constant 0 : i32
    %c0_i32_0 = arith.constant 0 : i32
    %c0_i32_1 = arith.constant 0 : i32
    %c0_i32_2 = arith.constant 0 : i32
    return %c0_i32, %c0_i32_0, %c0_i32_1 : i32, i32, i32
  }
  func.func @transform_4(%arg0: i32, %arg1: i32, %arg2: i32) -> (i32, i32, i32) {
    %c0_i32 = arith.constant 0 : i32
    %c0_i32_0 = arith.constant 0 : i32
    return %c0_i32, %arg0, %arg1 : i32, i32, i32
  }
}

module attributes {stable_mosaic.version = 11 : i64} {
  func.func @s4_out_kernel(%arg0: i32, %arg1: memref<16x64xbf16, #tpu.memory_space<vmem>>, %arg2: memref<16x64xf32, #tpu.memory_space<vmem>>, %arg3: memref<16x16xbf16, #tpu.memory_space<vmem>>, %arg4: memref<16x1xf32, #tpu.memory_space<vmem>>, %arg5: memref<16x64xf32, #tpu.memory_space<vmem>>) attributes {dimension_semantics = [#tpu.dimension_semantics<parallel>], iteration_bounds = array<i64: 1>, scalar_prefetch = 0 : i64, scratch_operands = 0 : i64, tpu.core_type = #tpu.core_type<tc>, window_params = [{transform_indices = @transform_0, window_bounds = array<i64: 16, 64>}, {transform_indices = @transform_1, window_bounds = array<i64: 16, 64>}, {pipeline_mode = #tpu.pipeline_mode<synchronous>, transform_indices = @transform_2, window_bounds = array<i64: 16, 16>}, {pipeline_mode = #tpu.pipeline_mode<synchronous>, transform_indices = @transform_3, window_bounds = array<i64: 16, 1>}, {transform_indices = @transform_4, window_bounds = array<i64: 16, 64>}]} {
    %c0 = arith.constant 0 : index
    %c0_0 = arith.constant 0 : index
    %0 = vector.load %arg1[%c0, %c0_0] : memref<16x64xbf16, #tpu.memory_space<vmem>>, vector<16x64xbf16>
    %c0_1 = arith.constant 0 : index
    %c0_2 = arith.constant 0 : index
    %1 = vector.load %arg3[%c0_1, %c0_2] : memref<16x16xbf16, #tpu.memory_space<vmem>>, vector<16x16xbf16>
    %cst = arith.constant dense<0.000000e+00> : vector<16x64xf32>
    %2 = tpu.matmul %1, %0, %cst {dimension_numbers = #tpu.dot_dimension_numbers<[1], [0], [0], [1], [0, 0, 1, 1], [], []>} : vector<16x16xbf16>, vector<16x64xbf16>, vector<16x64xf32> -> vector<16x64xf32>
    %c0_3 = arith.constant 0 : index
    %c0_4 = arith.constant 0 : index
    %3 = vector.load %arg4[%c0_3, %c0_4] : memref<16x1xf32, #tpu.memory_space<vmem>>, vector<16x1xf32>
    %4 = vector.broadcast %3 : vector<16x1xf32> to vector<16x64xf32>
    %5 = arith.addf %2, %4 : vector<16x64xf32>
    %c0_5 = arith.constant 0 : index
    %c0_6 = arith.constant 0 : index
    %6 = vector.load %arg2[%c0_5, %c0_6] : memref<16x64xf32, #tpu.memory_space<vmem>>, vector<16x64xf32>
    %7 = arith.addf %5, %6 : vector<16x64xf32>
    %c0_7 = arith.constant 0 : index
    %c0_8 = arith.constant 0 : index
    %8 = vector.load %arg5[%c0_7, %c0_8] : memref<16x64xf32, #tpu.memory_space<vmem>>, vector<16x64xf32>
    tpu.vector_store %arg5[%c0_7, %c0_8], %7 {strides = array<i32>} : memref<16x64xf32, #tpu.memory_space<vmem>>, vector<16x64xf32>,
    return
  }
  func.func @transform_0(%arg0: i32) -> (i32, i32) {
    %c0_i32 = arith.constant 0 : i32
    %c0_i32_0 = arith.constant 0 : i32
    return %c0_i32, %arg0 : i32, i32
  }
  func.func @transform_1(%arg0: i32) -> (i32, i32) {
    %c0_i32 = arith.constant 0 : i32
    %c0_i32_0 = arith.constant 0 : i32
    return %c0_i32, %arg0 : i32, i32
  }
  func.func @transform_2(%arg0: i32) -> (i32, i32) {
    %c0_i32 = arith.constant 0 : i32
    %c0_i32_0 = arith.constant 0 : i32
    %c0_i32_1 = arith.constant 0 : i32
    return %c0_i32, %c0_i32_0 : i32, i32
  }
  func.func @transform_3(%arg0: i32) -> (i32, i32) {
    %c0_i32 = arith.constant 0 : i32
    %c0_i32_0 = arith.constant 0 : i32
    %c0_i32_1 = arith.constant 0 : i32
    return %c0_i32, %c0_i32_0 : i32, i32
  }
  func.func @transform_4(%arg0: i32) -> (i32, i32) {
    %c0_i32 = arith.constant 0 : i32
    %c0_i32_0 = arith.constant 0 : i32
    return %c0_i32, %arg0 : i32, i32
  }
}

</mosaic_0001>

<bundles_post_ra>
// kernel: s4_layer_forward.3
= control target key start
LH: loop header
LB: loop body
LE: loop exit
PB: predicated region body
PF: predicated region fallthrough
CT: control target
= control target key end

     0   :  { %v118_v0 = vmov 0.0   ;;  %vm119_vm0 = vmmov 0   ;;  %v120_v3 = vmov 0   ;;  %vm45_vm1 = vcmask 130048   ;;  %s170_s0 = inlined_call_operand.vmem [shape: bf16[16,64], index: 0, kind: input, shape index: {}]   ;;  %s171_s2 = inlined_call_operand.vmem [shape: bf16[16,16], index: 2, kind: input, shape index: {}]   ;;  %s172_s3 = inlined_call_operand.vmem [shape: f32[16,1], index: 3, kind: input, shape index: {}]   ;;  %s173_s1 = inlined_call_operand.vmem [shape: f32[16,64], index: 1, kind: input, shape index: {}]   ;;  %s174_s4 = inlined_call_operand.vmem [shape: f32[16,64], index: 4, kind: output, shape index: {}]  }
   0x1   :  { %106 = vmatprep.subr.bf16.mxu0 %v118_v0  ;;  %v116_v1 = vld [vmem:[%s170_s0] sm:$0xff]   ;;  %108 = vmatprep.mubr.msk.bf16.mxu0 %vm119_vm0, %v118_v0  ;;  %v23_v5 = vld [vmem:[%s172_s3 + $0x8] sm:$0xff]  ;;  %vm94_vm2 = vcmask 523264  }
   0x2   :  { %v117_v2 = vld [vmem:[%s171_s2] sm:$0xff]   ;;  %115 = vset.pattern.permute.xlu0 %v120_v3  ;;  %107 = vmatpush3.bf16.msra.mxu0 %v116_v1  ;;  %v91_v13 = vld [vmem:[%s173_s1 + $0x8] sm:$0xff] }
   0x3   :  { %v22_v4 = vld [vmem:[%s172_s3] sm:$0xff] }
   0x4   :  { %26 = vperm.xlu0 %115, %v22_v4   ;;  %v90_v8 = vld [vmem:[%s173_s1] sm:$0xff] }
   0x5   :  { %109 = vmatmul.mubr.msk.bf16.vlgmr.msra.gmra.mrb[0].mxu0 %vm45_vm1, %v117_v2 }
   0x8   :  { %31 = vperm.xlu0 %115, %v23_v5  }
  0x83   :  { %v27_v6 = vpop.permute.xlu0 %26 }
  0x87   :  { %v32_v11 = vpop.permute.xlu0 %31 }
  0xd8   :  { %v83_v7 = vpop.f32.mrb[0].mxu0 }
  0xd9   :  { %v84_v9 = vadd.f32 %v83_v7, %v27_v6  ;;  %v110_v10 = vpop.f32.mrb[1].mxu0 }
  0xda   :  { %v86_v12 = vpop.f32.mrb[2].mxu0 }
  0xdb   :  { %v92_v14 = vadd.f32 %v90_v8, %v84_v9  ;;  %v87_v15 = vadd.f32 %v86_v12, %v32_v11  ;;  %v111_v16 = vpop.f32.mrb[3].mxu0 }
  0xdd   :  { %95 = vst.msk [vmem:[%s174_s4] sm:$0xff] %vm94_vm2, %v92_v14  ;;  %v93_v17 = vadd.f32 %v91_v13, %v87_v15 }
  0xdf   :  { %96 = vst.msk [vmem:[%s174_s4 + $0x8] sm:$0xff] %vm94_vm2, %v93_v17 }

// kernel: s4_layer_forward.2
= control target key start
LH: loop header
LB: loop body
LE: loop exit
PB: predicated region body
PF: predicated region fallthrough
CT: control target
= control target key end

     0   :  { %9 = vsyncpa [#allocation5], 0  ;;  %s2232_s15 = smov [#allocation4]   ;;  %s2927_s0 = inlined_call_operand.vmem [shape: f32[1,16,2,32], index: 0, kind: input, shape index: {}]   ;;  %s2928_s1 = inlined_call_operand.hbm [shape: bf16[16,32,32], index: 1, kind: input, shape index: {}]   ;;  %s2929_s2 = inlined_call_operand.vmem [shape: f32[16,32], index: 2, kind: input, shape index: {}]   ;;  %s2930_s3 = inlined_call_operand.vmem [shape: f32[16,1,1], index: 3, kind: input, shape index: {}]   ;;  %s2931_s4 = inlined_call_operand.vmem [shape: bf16[16,2,32], index: 4, kind: output, shape index: {}]  }
   0x1   :  { %s26_s16 = sshll.u32 %s2232_s15, 4  ;;  %s2208_s19 = scalar_lea.hbm %s2928_s1, 4096  ;;  %s27_s16 = int_to_ptr.vmem [resolvable:$true] %s26_s16 }
   0x2   :  { %p2209_p0 = scmp.ne.s32.totalorder %s2928_s1, %s2208_s19  ;;  %p2212_p1 = scmp.lt.u32.totalorder %s2208_s19, %s2928_s1 }
   0x4   :  { %p2214_p2 = pnand %p2212_p1, %p2209_p0 }
   0x6   :  { %2217 = shalt.err (!%p2214_p2)
}
   0x7   :  { %s2218_s24 = scalar_lea.vmem %s27_s16, 4096  ;;  %p2223_p4 = scmp.lt.s32.totalorder %s27_s16, %s27_s16 }
   0x8   :  { %p2219_p3 = scmp.ne.s32.totalorder %s27_s16, %s2218_s24  ;;  %p2224_p5 = scmp.lt.s32.totalorder %s2218_s24, %s2218_s24 }
   0xa   :  { %p2225_p6 = por %p2224_p5, %p2223_p4 }
   0xc   :  { %p2226_p7 = pnand %p2225_p6, %p2219_p3 }
   0xe   :  { %2229 = shalt.err (!%p2226_p7)
}
   0xf   :  { %s2233_s25 = smov 64   ;;  %s2234_s26 = smov 4  }
  0x10   :  { %32 = dma.hbm_to_vmem [thread:$0]  %s2928_s1, 4096, %s27_s16, [#allocation5], %s2233_s25, %s2233_s25, %s2234_s26  }
  0x11   :  { %2230 = dma.done.wait [#allocation5], 4096  }
  0x12   :  { %2231 = vsyncadd [#allocation5], 4294963200  ;;  %vm61_vm0 = vcmask 254976   ;;  %v2235_v0 = vmov 0.0   ;;  %vm2236_vm1 = vmmov 0   ;;  %v2141_v1 = vld [vmem:[#allocation4] sm:$0xff]  }
  0x13   :  { %2004 = vmatprep.subr.bf16.mxu0 %v2235_v0  ;;  %2012 = vmatprep.subr.bf16.mxu1 %v2235_v0  ;;  %62 = vst.msk [vmem:[#allocation3] sm:$0x3] %vm61_vm0, %v2235_v0  ;;  %63 = vst.msk [vmem:[#allocation3 + $0x2] sm:$0x3] %vm61_vm0, %v2235_v0  ;;  %v2142_v2 = vld [vmem:[#allocation4 + $0x10] sm:$0xff]   ;;  %v2143_v3 = vld [vmem:[#allocation4 + $0x8] sm:$0xff]  }
  0x14   :  { %64 = vst.msk [vmem:[#allocation3 + $0x4] sm:$0x3] %vm61_vm0, %v2235_v0  ;;  %65 = vst.msk [vmem:[#allocation3 + $0x6] sm:$0x3] %vm61_vm0, %v2235_v0  ;;  %2008 = vmatprep.mubr.msk.bf16.mxu0 %vm2236_vm1, %v2235_v0  ;;  %2016 = vmatprep.mubr.msk.bf16.mxu1 %vm2236_vm1, %v2235_v0  ;;  %v2144_v4 = vld [vmem:[#allocation4 + $0x18] sm:$0xff]   ;;  %v2237_v51 = vmov 0  }
  0x15   :  { %66 = vst.msk [vmem:[#allocation3 + $0x8] sm:$0x3] %vm61_vm0, %v2235_v0  ;;  %67 = vst.msk [vmem:[#allocation3 + $0xa] sm:$0x3] %vm61_vm0, %v2235_v0  ;;  %2005 = vmatpush3.bf16.msra.mxu0 %v2141_v1  ;;  %2013 = vmatpush3.bf16.msra.mxu1 %v2142_v2  ;;  %v82_v5 = vld [vmem:[%s2927_s0] sm:$0x3] }
  0x16   :  { %68 = vst.msk [vmem:[#allocation3 + $0xc] sm:$0x3] %vm61_vm0, %v2235_v0  ;;  %69 = vst.msk [vmem:[#allocation3 + $0xe] sm:$0x3] %vm61_vm0, %v2235_v0  ;;  %2006 = vmatprep.subr.bf16.mxu0 %v2235_v0  ;;  %2014 = vmatprep.subr.bf16.mxu1 %v2235_v0  ;;  %v83_v6 = vld [vmem:[%s2927_s0 + $0x2] sm:$0x3] }
  0x17   :  { %70 = vst.msk [vmem:[#allocation3 + $0x10] sm:$0x3] %vm61_vm0, %v2235_v0  ;;  %71 = vst.msk [vmem:[#allocation3 + $0x12] sm:$0x3] %vm61_vm0, %v2235_v0  ;;  %v84_v7 = vld [vmem:[%s2927_s0 + $0x4] sm:$0x3]  ;;  %2139 = vset.pattern.permute.xlu0 %v2237_v51  ;;  %2140 = vset.pattern.permute.xlu1 %v2237_v51 }
  0x18   :  { %72 = vst.msk [vmem:[#allocation3 + $0x14] sm:$0x3] %vm61_vm0, %v2235_v0  ;;  %73 = vst.msk [vmem:[#allocation3 + $0x16] sm:$0x3] %vm61_vm0, %v2235_v0  ;;  %v85_v8 = vld [vmem:[%s2927_s0 + $0x6] sm:$0x3] }
  0x19   :  { %74 = vst.msk [vmem:[#allocation3 + $0x18] sm:$0x3] %vm61_vm0, %v2235_v0  ;;  %75 = vst.msk [vmem:[#allocation3 + $0x1a] sm:$0x3] %vm61_vm0, %v2235_v0  ;;  %2007 = vmatpush3.bf16.msra.mxu0 %v2143_v3  ;;  %2015 = vmatpush3.bf16.msra.mxu1 %v2144_v4  ;;  %v99_v9 = vsel %vm61_vm0, %v82_v5, 0.0  ;;  %v100_v10 = vsel %vm61_vm0, %v83_v6, 0.0 }
  0x1a   :  { %76 = vst.msk [vmem:[#allocation3 + $0x1c] sm:$0x3] %vm61_vm0, %v2235_v0  ;;  %77 = vst.msk [vmem:[#allocation3 + $0x1e] sm:$0x3] %vm61_vm0, %v2235_v0  ;;  %2020 = vmatprep.subr.bf16.mxu0 %v2235_v0  ;;  %2028 = vmatprep.subr.bf16.mxu1 %v2235_v0  ;;  %v102_v11 = vsel %vm61_vm0, %v84_v7, 0.0  ;;  %v101_v13 = vadd.f32 %v100_v10, %v99_v9  ;;  %v104_v14 = vsel %vm61_vm0, %v85_v8, 0.0 }
  0x1b   :  { %v86_v12 = vld [vmem:[%s2927_s0 + $0x8] sm:$0x3]  ;;  %v87_v15 = vld [vmem:[%s2927_s0 + $0xa] sm:$0x3]  ;;  %v88_v18 = vld [vmem:[%s2927_s0 + $0xc] sm:$0x3] }
  0x1c   :  { %v103_v16 = vadd.f32 %v102_v11, %v101_v13  ;;  %v106_v17 = vsel %vm61_vm0, %v86_v12, 0.0  ;;  %v108_v20 = vsel %vm61_vm0, %v87_v15, 0.0  ;;  %v2348_v21 = vld [vmem:[%s2927_s0 + $0xe] sm:$0x3]  ;;  %v110_v23 = vsel %vm61_vm0, %v88_v18, 0.0 }
  0x1d   :  { %v2354_v24 = vld [vmem:[%s2927_s0 + $0x10] sm:$0x3]  ;;  %v112_v26 = vsel %vm61_vm0, %v2348_v21, 0.0  ;;  %v2361_v27 = vld [vmem:[%s2927_s0 + $0x12] sm:$0x3]  ;;  %vm232_vm2 = vcmask 253952  }
  0x1e   :  { %v105_v19 = vadd.f32 %v104_v14, %v103_v16  ;;  %v114_v29 = vsel %vm61_vm0, %v2354_v24, 0.0  ;;  %v2368_v30 = vld [vmem:[%s2927_s0 + $0x14] sm:$0x3]  ;;  %v116_v32 = vsel %vm61_vm0, %v2361_v27, 0.0  ;;  %v2375_v33 = vld [vmem:[%s2927_s0 + $0x16] sm:$0x3] }
  0x1f   :  { %v118_v35 = vsel %vm61_vm0, %v2368_v30, 0.0  ;;  %v2382_v36 = vld [vmem:[%s2927_s0 + $0x18] sm:$0x3]  ;;  %v120_v38 = vsel %vm61_vm0, %v2375_v33, 0.0  ;;  %v2389_v39 = vld [vmem:[%s2927_s0 + $0x1a] sm:$0x3] }
  0x20   :  { %v107_v22 = vadd.f32 %v106_v17, %v105_v19  ;;  %v122_v41 = vsel %vm61_vm0, %v2382_v36, 0.0  ;;  %v2396_v42 = vld [vmem:[%s2927_s0 + $0x1c] sm:$0x3]  ;;  %v124_v44 = vsel %vm61_vm0, %v2389_v39, 0.0  ;;  %v2403_v45 = vld [vmem:[%s2927_s0 + $0x1e] sm:$0x3] }
  0x21   :  { %v126_v47 = vsel %vm61_vm0, %v2396_v42, 0.0  ;;  %v128_v49 = vsel %vm61_vm0, %v2403_v45, 0.0  ;;  %v1940_v53 = vld [vmem:[%s2930_s3] ss:$0 sm:$0xff]  ;;  %v1942_v55 = vld [vmem:[%s2930_s3 + $0x2] ss:$0 sm:$0xff] }
  0x22   :  { %v109_v25 = vadd.f32 %v108_v20, %v107_v22  ;;  %1411 = vperm.xlu0 %2139, %v1940_v53   ;;  %1419 = vperm.xlu1 %2140, %v1942_v55   ;;  %v1941_v56 = vld [vmem:[%s2930_s3 + $0x1] ss:$0 sm:$0xff]  ;;  %v1943_v60 = vld [vmem:[%s2930_s3 + $0x3] ss:$0 sm:$0xff]  ;;  %v1944_v62 = vld [vmem:[%s2930_s3 + $0x4] ss:$0 sm:$0xff] }
  0x23   :  { %v1945_v4 = vld [vmem:[%s2930_s3 + $0x5] ss:$0 sm:$0xff]  ;;  %v1947_v13 = vld [vmem:[%s2930_s3 + $0x7] ss:$0 sm:$0xff]  ;;  %v1948_v19 = vld [vmem:[%s2930_s3 + $0x8] ss:$0 sm:$0xff] }
  0x24   :  { %v111_v28 = vadd.f32 %v110_v23, %v109_v25  ;;  %v1949_v23 = vld [vmem:[%s2930_s3 + $0x9] ss:$0 sm:$0xff]  ;;  %vm359_vm3 = vcmask 261120  }
  0x26   :  { %v113_v31 = vadd.f32 %v112_v26, %v111_v28  ;;  %1415 = vperm.xlu0 %2139, %v1941_v56   ;;  %1423 = vperm.xlu1 %2140, %v1943_v60   ;;  %v1955_v56 = vld [vmem:[%s2930_s3 + $0xf] ss:$0 sm:$0xff] }
  0x28   :  { %v115_v34 = vadd.f32 %v114_v29, %v113_v31  ;;  %v1950_v31 = vld [vmem:[%s2930_s3 + $0xa] ss:$0 sm:$0xff] }
  0x2a   :  { %v117_v37 = vadd.f32 %v116_v32, %v115_v34  ;;  %1427 = vperm.xlu0 %2139, %v1944_v62   ;;  %1431 = vperm.xlu1 %2140, %v1945_v4  }
  0x2c   :  { %v119_v40 = vadd.f32 %v118_v35, %v117_v37  ;;  %v1951_v35 = vld [vmem:[%s2930_s3 + $0xb] ss:$0 sm:$0xff] }
  0x2e   :  { %v121_v43 = vadd.f32 %v120_v38, %v119_v40  ;;  %1439 = vperm.xlu1 %2140, %v1947_v13  }
  0x30   :  { %v123_v46 = vadd.f32 %v122_v41, %v121_v43  ;;  %v1952_v43 = vld [vmem:[%s2930_s3 + $0xc] ss:$0 sm:$0xff] }
  0x32   :  { %v125_v48 = vadd.f32 %v124_v44, %v123_v46  ;;  %1447 = vperm.xlu1 %2140, %v1949_v23  }
  0x34   :  { %v127_v50 = vadd.f32 %v126_v47, %v125_v48  ;;  %v1953_v47 = vld [vmem:[%s2930_s3 + $0xd] ss:$0 sm:$0xff] }
  0x36   :  { %v129_v52 = vadd.f32 %v128_v49, %v127_v50  ;;  %1455 = vperm.xlu1 %2140, %v1951_v35  }
  0x38   :  { %v2412_v54 = vmul.f32 0.0625, %v129_v52  ;;  %v1954_v52 = vld [vmem:[%s2930_s3 + $0xe] ss:$0 sm:$0xff] }
  0x3a   :  { %v2421_v57 = vsub.f32 %v82_v5, %v2412_v54  ;;  %v2424_v58 = vsub.f32 %v83_v6, %v2412_v54  ;;  %v2427_v59 = vsub.f32 %v84_v7, %v2412_v54  ;;  %v2433_v61 = vsub.f32 %v85_v8, %v2412_v54  ;;  %v1946_v8 = vld [vmem:[%s2930_s3 + $0x6] ss:$0 sm:$0xff]  ;;  %1463 = vperm.xlu1 %2140, %v1953_v47  }
  0x3b   :  { %v2439_v63 = vsub.f32 %v86_v12, %v2412_v54  ;;  %v2451_v5 = vsub.f32 %v87_v15, %v2412_v54  ;;  %v2456_v7 = vsub.f32 %v88_v18, %v2412_v54  ;;  %v2471_v15 = vsub.f32 %v2348_v21, %v2412_v54  ;;  %1435 = vperm.xlu0 %2139, %v1946_v8   ;;  %v2146_v47 = vld [vmem:[#allocation4 + $0x30] sm:$0xff]  }
  0x3c   :  { %v148_v1 = vmul.f32 %v2421_v57, %v2421_v57  ;;  %v149_v2 = vmul.f32 %v2424_v58, %v2424_v58  ;;  %v150_v3 = vmul.f32 %v2427_v59, %v2427_v59  ;;  %v151_v6 = vmul.f32 %v2433_v61, %v2433_v61 }
  0x3d   :  { %v152_v9 = vmul.f32 %v2439_v63, %v2439_v63  ;;  %v153_v16 = vmul.f32 %v2451_v5, %v2451_v5  ;;  %v2481_v20 = vsub.f32 %v2354_v24, %v2412_v54  ;;  %v154_v21 = vmul.f32 %v2456_v7, %v2456_v7 }
  0x3e   :  { %v164_v10 = vsel %vm61_vm0, %v148_v1, 0.0  ;;  %v165_v11 = vsel %vm61_vm0, %v149_v2, 0.0  ;;  %v167_v12 = vsel %vm61_vm0, %v150_v3, 0.0  ;;  %v169_v17 = vsel %vm61_vm0, %v151_v6, 0.0  ;;  %1471 = vperm.xlu1 %2140, %v1955_v56   ;;  %v2152_v56 = vld [vmem:[#allocation4 + $0x58] sm:$0xff]  }
  0x3f   :  { %v166_v14 = vadd.f32 %v165_v11, %v164_v10  ;;  %v171_v22 = vsel %vm61_vm0, %v152_v9, 0.0  ;;  %v2491_v26 = vsub.f32 %v2361_v27, %v2412_v54  ;;  %v155_v28 = vmul.f32 %v2471_v15, %v2471_v15  ;;  %1443 = vperm.xlu0 %2139, %v1948_v19  }
  0x40   :  { %v173_v24 = vsel %vm61_vm0, %v153_v16, 0.0  ;;  %v2501_v32 = vsub.f32 %v2368_v30, %v2412_v54  ;;  %v156_v27 = vmul.f32 %v2481_v20, %v2481_v20  ;;  %v175_v34 = vsel %vm61_vm0, %v154_v21, 0.0 }
  0x41   :  { %v168_v18 = vadd.f32 %v167_v12, %v166_v14  ;;  %v2511_v38 = vsub.f32 %v2375_v33, %v2412_v54  ;;  %v157_v40 = vmul.f32 %v2491_v26, %v2491_v26  ;;  %v177_v30 = vsel %vm61_vm0, %v155_v28, 0.0 }
  0x42   :  { %v2521_v44 = vsub.f32 %v2382_v36, %v2412_v54  ;;  %v158_v33 = vmul.f32 %v2501_v32, %v2501_v32  ;;  %v179_v46 = vsel %vm61_vm0, %v156_v27, 0.0  ;;  %v2531_v49 = vsub.f32 %v2389_v39, %v2412_v54 }
  0x43   :  { %v170_v25 = vadd.f32 %v169_v17, %v168_v18  ;;  %1451 = vperm.xlu0 %2139, %v1950_v31   ;;  %v159_v50 = vmul.f32 %v2511_v38, %v2511_v38  ;;  %v181_v36 = vsel %vm61_vm0, %v157_v40, 0.0  ;;  %v146_v53 = vsub.f32 %v2396_v42, %v2412_v54 }
  0x44   :  { %v160_v55 = vmul.f32 %v2521_v44, %v2521_v44  ;;  %v183_v39 = vsel %vm61_vm0, %v158_v33, 0.0  ;;  %v147_v62 = vsub.f32 %v2403_v45, %v2412_v54  ;;  %v161_v1 = vmul.f32 %v2531_v49, %v2531_v49 }
  0x45   :  { %v172_v29 = vadd.f32 %v171_v22, %v170_v25  ;;  %v185_v2 = vsel %vm61_vm0, %v159_v50, 0.0  ;;  %v162_v3 = vmul.f32 %v146_v53, %v146_v53  ;;  %v2147_v50 = vld [vmem:[#allocation4 + $0x28] sm:$0xff]  }
  0x46   :  { %v187_v4 = vsel %vm61_vm0, %v160_v55, 0.0  ;;  %v163_v8 = vmul.f32 %v147_v62, %v147_v62  ;;  %v189_v9 = vsel %vm61_vm0, %v161_v1, 0.0  ;;  %v2150_v55 = vld [vmem:[#allocation4 + $0x50] sm:$0xff]  }
  0x47   :  { %v174_v37 = vadd.f32 %v173_v24, %v172_v29  ;;  %1459 = vperm.xlu0 %2139, %v1952_v43   ;;  %v191_v11 = vsel %vm61_vm0, %v162_v3, 0.0  ;;  %v2156_v3 = vld [vmem:[#allocation4 + $0x78] sm:$0xff]  }
  0x48   :  { %v193_v45 = vsel %vm61_vm0, %v163_v8, 0.0 }
  0x49   :  { %v176_v41 = vadd.f32 %v175_v34, %v174_v37 }
  0x4b   :  { %v178_v48 = vadd.f32 %v177_v30, %v176_v41  ;;  %1467 = vperm.xlu0 %2139, %v1954_v52  }
  0x4d   :  { %v180_v51 = vadd.f32 %v179_v46, %v178_v48 }
  0x4f   :  { %v182_v60 = vadd.f32 %v181_v36, %v180_v51  ;;  %v2148_v36 = vld [vmem:[#allocation4 + $0x38] sm:$0xff]   ;;  %v2149_v51 = vld [vmem:[#allocation4 + $0x40] sm:$0xff]  }
  0x51   :  { %v184_v42 = vadd.f32 %v183_v39, %v182_v60  ;;  %v2151_v39 = vld [vmem:[#allocation4 + $0x48] sm:$0xff]   ;;  %v2153_v60 = vld [vmem:[#allocation4 + $0x60] sm:$0xff]  }
  0x53   :  { %v186_v6 = vadd.f32 %v185_v2, %v184_v42  ;;  %v2154_v2 = vld [vmem:[#allocation4 + $0x70] sm:$0xff]   ;;  %v2155_v42 = vld [vmem:[#allocation4 + $0x68] sm:$0xff]  }
  0x55   :  { %v188_v10 = vadd.f32 %v187_v4, %v186_v6  ;;  %v2157_v4 = vld [vmem:[#allocation4 + $0x80] sm:$0xff]  }
  0x57   :  { %v190_v12 = vadd.f32 %v189_v9, %v188_v10  ;;  %v2158_v9 = vld [vmem:[#allocation4 + $0x90] sm:$0xff]   ;;  %v2159_v10 = vld [vmem:[#allocation4 + $0x88] sm:$0xff]  }
  0x59   :  { %v192_v54 = vadd.f32 %v191_v11, %v190_v12  ;;  %v2160_v11 = vld [vmem:[#allocation4 + $0x98] sm:$0xff]   ;;  %v2161_v12 = vld [vmem:[#allocation4 + $0xa0] sm:$0xff]  }
  0x5b   :  { %v194_v13 = vadd.f32 %v193_v45, %v192_v54 }
  0x5d   :  { %v195_v14 = vmul.f32 0.0625, %v194_v13  ;;  %v2162_v13 = vld [vmem:[#allocation4 + $0xb0] sm:$0xff]  }
  0x5f   :  { %v196_v16 = vadd.f32 1e-05, %v195_v14  ;;  %v2163_v14 = vld [vmem:[#allocation4 + $0xa8] sm:$0xff]  }
  0x61   :  { %2174 = vrsqrt.f32 %v196_v16  ;;  %v2164_v16 = vld [vmem:[#allocation4 + $0xb8] sm:$0xff]  }
  0x6b   :  { %v2175_v17 = vpop.eup %2174 }
  0x6c   :  { %v198_v18 = vmul.f32 %v2175_v17, %v2421_v57  ;;  %v199_v19 = vmul.f32 %v2175_v17, %v2424_v58  ;;  %v200_v21 = vmul.f32 %v2175_v17, %v2427_v59  ;;  %v201_v22 = vmul.f32 %v2175_v17, %v2433_v61 }
  0x6d   :  { %v202_v23 = vmul.f32 %v2175_v17, %v2439_v63  ;;  %v203_v25 = vmul.f32 %v2175_v17, %v2451_v5  ;;  %v204_v28 = vmul.f32 %v2175_v17, %v2456_v7  ;;  %v205_v24 = vmul.f32 %v2175_v17, %v2471_v15 }
  0x6e   :  { %v214_v29 = vpack.c.bf16 %v198_v18, %v198_v18  ;;  %v215_v31 = vpack.c.bf16 %v199_v19, %v199_v19  ;;  %v216_v27 = vpack.c.bf16 %v200_v21, %v200_v21  ;;  %v217_v34 = vpack.c.bf16 %v201_v22, %v201_v22  ;;  %v2166_v21 = vld [vmem:[#allocation4 + $0xd0] sm:$0xff]   ;;  %v2167_v22 = vld [vmem:[#allocation4 + $0xc8] sm:$0xff]  }
  0x6f   :  { %v218_v35 = vpack.c.bf16 %v202_v23, %v202_v23  ;;  %v219_v57 = vpack.c.bf16 %v203_v25, %v203_v25  ;;  %v220_v37 = vpack.c.bf16 %v204_v28, %v204_v28  ;;  %v221_v58 = vpack.c.bf16 %v205_v24, %v205_v24  ;;  %v2168_v23 = vld [vmem:[#allocation4 + $0xd8] sm:$0xff]   ;;  %v2169_v25 = vld [vmem:[#allocation4 + $0xe0] sm:$0xff]  }
  0x70   :  { %233 = vst.msk [vmem:[#allocation2] sm:$0x1] %vm232_vm2, %v214_v29  ;;  %234 = vst.msk [vmem:[#allocation2 + $0x1] sm:$0x1] %vm232_vm2, %v215_v31  ;;  %v206_v59 = vmul.f32 %v2175_v17, %v2481_v20  ;;  %v207_v61 = vmul.f32 %v2175_v17, %v2491_v26  ;;  %v208_v63 = vmul.f32 %v2175_v17, %v2501_v32  ;;  %v2170_v29 = vld [vmem:[#allocation4 + $0xf0] sm:$0xff]   ;;  %v2171_v31 = vld [vmem:[#allocation4 + $0xe8] sm:$0xff]  }
  0x71   :  { %235 = vst.msk [vmem:[#allocation2 + $0x2] sm:$0x1] %vm232_vm2, %v216_v27  ;;  %236 = vst.msk [vmem:[#allocation2 + $0x3] sm:$0x1] %vm232_vm2, %v217_v34  ;;  %v209_v5 = vmul.f32 %v2175_v17, %v2511_v38  ;;  %v210_v7 = vmul.f32 %v2175_v17, %v2521_v44  ;;  %v211_v15 = vmul.f32 %v2175_v17, %v2531_v49  ;;  %v2145_v44 = vld [vmem:[#allocation4 + $0x20] sm:$0xff]   ;;  %v2172_v27 = vld [vmem:[#allocation4 + $0xf8] sm:$0xff]  }
  0x72   :  { %237 = vst.msk [vmem:[#allocation2 + $0x4] sm:$0x1] %vm232_vm2, %v218_v35  ;;  %238 = vst.msk [vmem:[#allocation2 + $0x5] sm:$0x1] %vm232_vm2, %v219_v57  ;;  %v212_v40 = vmul.f32 %v2175_v17, %v146_v53  ;;  %v213_v20 = vmul.f32 %v2175_v17, %v147_v62  ;;  %v222_v30 = vpack.c.bf16 %v206_v59, %v206_v59  ;;  %v2165_v17 = vld [vmem:[#allocation4 + $0xc0] sm:$0xff]  }
  0x73   :  { %239 = vst.msk [vmem:[#allocation2 + $0x6] sm:$0x1] %vm232_vm2, %v220_v37  ;;  %240 = vst.msk [vmem:[#allocation2 + $0x7] sm:$0x1] %vm232_vm2, %v221_v58  ;;  %v223_v26 = vpack.c.bf16 %v207_v61, %v207_v61  ;;  %v224_v41 = vpack.c.bf16 %v208_v63, %v208_v63  ;;  %v225_v32 = vpack.c.bf16 %v209_v5, %v209_v5  ;;  %v2238_v57 = vmov 1966171168  }
  0x74   :  { %v226_v43 = vpack.c.bf16 %v210_v7, %v210_v7  ;;  %v227_v38 = vpack.c.bf16 %v211_v15, %v211_v15  ;;  %v228_v33 = vpack.c.bf16 %v212_v40, %v212_v40  ;;  %v229_v46 = vpack.c.bf16 %v213_v20, %v213_v20  ;;  %241 = vst.msk [vmem:[#allocation2 + $0x8] sm:$0x1] %vm232_vm2, %v222_v30  ;;  %v1506_v5 = vld [vmem:[%s2929_s2] sm:$0xff]  ;;  %v267_v7 = vld [vmem:[#allocation3] sm:$0x3] }
  0x75   :  { %242 = vst.msk [vmem:[#allocation2 + $0x9] sm:$0x1] %vm232_vm2, %v223_v26  ;;  %243 = vst.msk [vmem:[#allocation2 + $0xa] sm:$0x1] %vm232_vm2, %v224_v41  ;;  %v1512_v37 = vunpack.c.l.s4 %v2238_v57  ;;  %v1514_v58 = vlaneseq  ;;  %v268_v15 = vld [vmem:[#allocation3 + $0x2] sm:$0x3] }
  0x76   :  { %244 = vst.msk [vmem:[#allocation2 + $0xb] sm:$0x1] %vm232_vm2, %v225_v32  ;;  %245 = vst.msk [vmem:[#allocation2 + $0xc] sm:$0x1] %vm232_vm2, %v226_v43 }
  0x77   :  { %246 = vst.msk [vmem:[#allocation2 + $0xd] sm:$0x1] %vm232_vm2, %v227_v38  ;;  %247 = vst.msk [vmem:[#allocation2 + $0xe] sm:$0x1] %vm232_vm2, %v228_v33  ;;  %v251_v48 = vld [vmem:[#allocation2] sm:$0x1]  ;;  %v1513_v59 = vunpack.c.0.s8 %v1512_v37 }
  0x78   :  { %248 = vst.msk [vmem:[#allocation2 + $0xf] sm:$0x1] %vm232_vm2, %v229_v46  ;;  %v252_v49 = vld [vmem:[#allocation2 + $0x1] sm:$0x1]  ;;  %2009 = vmatmul.mubr.msk.bf16.vlgmr.msra.gmra.mrb[0].mxu0 %vm359_vm3, %v251_v48  ;;  %v253_v52 = vld [vmem:[#allocation2 + $0x2] sm:$0x1] }
  0x79   :  { %2017 = vmatmul.mubr.msk.bf16.vlgmr.msra.gmra.mrb[0].mxu1 %vm359_vm3, %v252_v49  ;;  %2021 = vmatpush3.bf16.msra.mxu0 %v2145_v44  ;;  %v254_v53 = vld [vmem:[#allocation2 + $0x3] sm:$0x1]  ;;  %v255_v62 = vld [vmem:[#allocation2 + $0x4] sm:$0x1]  ;;  %v256_v1 = vld [vmem:[#allocation2 + $0x5] sm:$0x1] }
  0x7a   :  { %2029 = vmatpush3.bf16.msra.mxu1 %v2146_v47  ;;  %2022 = vmatprep.subr.bf16.mxu0 %v2235_v0  ;;  %v257_v6 = vld [vmem:[#allocation2 + $0x6] sm:$0x1]  ;;  %v258_v8 = vld [vmem:[#allocation2 + $0x7] sm:$0x1]  ;;  %v1515_v61 = vshrl.u32 %v1514_v58, 7 }
  0x7b   :  { %2030 = vmatprep.subr.bf16.mxu1 %v2235_v0  ;;  %2024 = vmatprep.mubr.msk.bf16.mxu0 %vm2236_vm1, %v2235_v0  ;;  %v259_v45 = vld [vmem:[#allocation2 + $0x8] sm:$0x1]  ;;  %v1266_v41 = vld [vmem:[#allocation2] sm:$0x1]  ;;  %v1267_v32 = vld [vmem:[#allocation2 + $0x1] sm:$0x1] }
  0x7c   :  { %2032 = vmatprep.mubr.msk.bf16.mxu1 %vm2236_vm1, %v2235_v0  ;;  %v260_v54 = vld [vmem:[#allocation2 + $0x9] sm:$0x1]  ;;  %v261_v18 = vld [vmem:[#allocation2 + $0xa] sm:$0x1]  ;;  %v2656_v63 = vsub.s32 %v1513_v59, %v1515_v61 }
  0x7d   :  { %2023 = vmatpush3.bf16.msra.mxu0 %v2147_v50  ;;  %v262_v19 = vld [vmem:[#allocation2 + $0xb] sm:$0x1]  ;;  %v263_v28 = vld [vmem:[#allocation2 + $0xc] sm:$0x1] }
  0x7e   :  { %2031 = vmatpush3.bf16.msra.mxu1 %v2148_v36  ;;  %2036 = vmatprep.subr.bf16.mxu0 %v2235_v0  ;;  %v264_v24 = vld [vmem:[#allocation2 + $0xd] sm:$0x1]  ;;  %v265_v34 = vld [vmem:[#allocation2 + $0xe] sm:$0x1]  ;;  %v1282_v36 = vunpack.c.l.bf16 %v1266_v41 }
  0x7f   :  { %2044 = vmatprep.subr.bf16.mxu1 %v2235_v0  ;;  %v266_v35 = vld [vmem:[#allocation2 + $0xf] sm:$0x1] }
  0x80   :  { %2025 = vmatmul.mubr.msk.bf16.vlgmr.msra.gmra.mrb[4].mxu0 %vm359_vm3, %v253_v52 }
  0x81   :  { %2033 = vmatmul.mubr.msk.bf16.vlgmr.msra.gmra.mrb[4].mxu1 %vm359_vm3, %v254_v53  ;;  %2037 = vmatpush3.bf16.msra.mxu0 %v2149_v51  ;;  %v1283_v51 = vunpack.c.l.bf16 %v1267_v32 }
  0x82   :  { %2045 = vmatpush3.bf16.msra.mxu1 %v2150_v55  ;;  %2038 = vmatprep.subr.bf16.mxu0 %v2235_v0  ;;  %v2665_v55 = vsub.s32 0, %v1515_v61 }
  0x83   :  { %2046 = vmatprep.subr.bf16.mxu1 %v2235_v0  ;;  %2040 = vmatprep.mubr.msk.bf16.mxu0 %vm2236_vm1, %v2235_v0 }
  0x84   :  { %2048 = vmatprep.mubr.msk.bf16.mxu1 %vm2236_vm1, %v2235_v0 }
  0x85   :  { %2039 = vmatpush3.bf16.msra.mxu0 %v2151_v39 }
  0x86   :  { %2047 = vmatpush3.bf16.msra.mxu1 %v2152_v56  ;;  %2052 = vmatprep.subr.bf16.mxu0 %v2235_v0  ;;  %v269_v56 = vld [vmem:[#allocation3 + $0x4] sm:$0x3] }
  0x87   :  { %2060 = vmatprep.subr.bf16.mxu1 %v2235_v0 }
  0x88   :  { %2041 = vmatmul.mubr.msk.bf16.vlgmr.msra.gmra.mrb[8].mxu0 %vm359_vm3, %v255_v62 }
  0x89   :  { %2049 = vmatmul.mubr.msk.bf16.vlgmr.msra.gmra.mrb[8].mxu1 %vm359_vm3, %v256_v1  ;;  %2053 = vmatpush3.bf16.msra.mxu0 %v2153_v60  ;;  %v270_v60 = vld [vmem:[#allocation3 + $0x6] sm:$0x3] }
  0x8a   :  { %2061 = vmatpush3.bf16.msra.mxu1 %v2154_v2  ;;  %2054 = vmatprep.subr.bf16.mxu0 %v2235_v0 }
  0x8b   :  { %2062 = vmatprep.subr.bf16.mxu1 %v2235_v0  ;;  %2056 = vmatprep.mubr.msk.bf16.mxu0 %vm2236_vm1, %v2235_v0 }
  0x8c   :  { %2064 = vmatprep.mubr.msk.bf16.mxu1 %vm2236_vm1, %v2235_v0 }
  0x8d   :  { %2055 = vmatpush3.bf16.msra.mxu0 %v2155_v42  ;;  %v1510_v42 = vcombine.high %v1506_v5, %v1506_v5 }
  0x8e   :  { %2063 = vmatpush3.bf16.msra.mxu1 %v2156_v3  ;;  %2068 = vmatprep.subr.bf16.mxu0 %v2235_v0  ;;  %v1268_v3 = vld [vmem:[#allocation2 + $0x2] sm:$0x1] }
  0x8f   :  { %2076 = vmatprep.subr.bf16.mxu1 %v2235_v0 }
  0x90   :  { %2057 = vmatmul.mubr.msk.bf16.vlgmr.msra.gmra.mrb[12].mxu0 %vm359_vm3, %v257_v6 }
  0x91   :  { %2065 = vmatmul.mubr.msk.bf16.vlgmr.msra.gmra.mrb[12].mxu1 %vm359_vm3, %v258_v8  ;;  %2069 = vmatpush3.bf16.msra.mxu0 %v2157_v4  ;;  %v1269_v8 = vld [vmem:[#allocation2 + $0x3] sm:$0x1] }
  0x92   :  { %2077 = vmatpush3.bf16.msra.mxu1 %v2158_v9  ;;  %2070 = vmatprep.subr.bf16.mxu0 %v2235_v0 }
  0x93   :  { %2078 = vmatprep.subr.bf16.mxu1 %v2235_v0  ;;  %2072 = vmatprep.mubr.msk.bf16.mxu0 %vm2236_vm1, %v2235_v0 }
  0x94   :  { %2080 = vmatprep.mubr.msk.bf16.mxu1 %vm2236_vm1, %v2235_v0 }
  0x95   :  { %2071 = vmatpush3.bf16.msra.mxu0 %v2159_v10 }
  0x96   :  { %2079 = vmatpush3.bf16.msra.mxu1 %v2160_v11  ;;  %2084 = vmatprep.subr.bf16.mxu0 %v2235_v0 }
  0x97   :  { %2092 = vmatprep.subr.bf16.mxu1 %v2235_v0 }
  0x98   :  { %2073 = vmatmul.mubr.msk.bf16.vlgmr.msra.gmra.mrb[16].mxu0 %vm359_vm3, %v259_v45 }
  0x99   :  { %2081 = vmatmul.mubr.msk.bf16.vlgmr.msra.gmra.mrb[16].mxu1 %vm359_vm3, %v260_v54  ;;  %2085 = vmatpush3.bf16.msra.mxu0 %v2161_v12 }
  0x9a   :  { %2093 = vmatpush3.bf16.msra.mxu1 %v2162_v13  ;;  %2086 = vmatprep.subr.bf16.mxu0 %v2235_v0 }
  0x9b   :  { %2094 = vmatprep.subr.bf16.mxu1 %v2235_v0  ;;  %2088 = vmatprep.mubr.msk.bf16.mxu0 %vm2236_vm1, %v2235_v0 }
  0x9c   :  { %2096 = vmatprep.mubr.msk.bf16.mxu1 %vm2236_vm1, %v2235_v0 }
  0x9d   :  { %2087 = vmatpush3.bf16.msra.mxu0 %v2163_v14 }
  0x9e   :  { %2095 = vmatpush3.bf16.msra.mxu1 %v2164_v16  ;;  %2100 = vmatprep.subr.bf16.mxu0 %v2235_v0 }
  0x9f   :  { %2108 = vmatprep.subr.bf16.mxu1 %v2235_v0 }
  0xa0   :  { %2089 = vmatmul.mubr.msk.bf16.vlgmr.msra.gmra.mrb[20].mxu0 %vm359_vm3, %v261_v18 }
  0xa1   :  { %2097 = vmatmul.mubr.msk.bf16.vlgmr.msra.gmra.mrb[20].mxu1 %vm359_vm3, %v262_v19  ;;  %2101 = vmatpush3.bf16.msra.mxu0 %v2165_v17  ;;  %v1412_v40 = vpop.permute.xlu0 %1411  ;;  %v1420_v20 = vpop.permute.xlu1 %1419  ;;  %v1284_v19 = vunpack.c.l.bf16 %v1268_v3 }
  0xa2   :  { %2109 = vmatpush3.bf16.msra.mxu1 %v2166_v21  ;;  %2102 = vmatprep.subr.bf16.mxu0 %v2235_v0  ;;  %v1474_v62 = vmul.f32 %v1412_v40, %v1282_v36 }
  0xa3   :  { %2110 = vmatprep.subr.bf16.mxu1 %v2235_v0  ;;  %2104 = vmatprep.mubr.msk.bf16.mxu0 %vm2236_vm1, %v2235_v0  ;;  %v1476_v37 = vmul.f32 %v1420_v20, %v1284_v19 }
  0xa4   :  { %2112 = vmatprep.mubr.msk.bf16.mxu1 %vm2236_vm1, %v2235_v0 }
  0xa5   :  { %2103 = vmatpush3.bf16.msra.mxu0 %v2167_v22  ;;  %v1416_v52 = vpop.permute.xlu0 %1415  ;;  %v1424_v2 = vpop.permute.xlu1 %1423 }
  0xa6   :  { %2111 = vmatpush3.bf16.msra.mxu1 %v2168_v23  ;;  %2116 = vmatprep.subr.bf16.mxu0 %v2235_v0  ;;  %v1475_v1 = vmul.f32 %v1416_v52, %v1283_v51 }
  0xa7   :  { %2124 = vmatprep.subr.bf16.mxu1 %v2235_v0 }
  0xa8   :  { %2105 = vmatmul.mubr.msk.bf16.vlgmr.msra.gmra.mrb[24].mxu0 %vm359_vm3, %v263_v28  ;;  %v1524_v28 = vrot.slane %v1510_v42, %v2656_v63 }
  0xa9   :  { %2113 = vmatmul.mubr.msk.bf16.vlgmr.msra.gmra.mrb[24].mxu1 %vm359_vm3, %v264_v24  ;;  %2117 = vmatpush3.bf16.msra.mxu0 %v2169_v25  ;;  %v1285_v25 = vunpack.c.l.bf16 %v1269_v8  ;;  %v1432_v61 = vpop.permute.xlu1 %1431 }
  0xaa   :  { %2125 = vmatpush3.bf16.msra.mxu1 %v2170_v29  ;;  %2118 = vmatprep.subr.bf16.mxu0 %v2235_v0 }
  0xab   :  { %2126 = vmatprep.subr.bf16.mxu1 %v2235_v0  ;;  %2120 = vmatprep.mubr.msk.bf16.mxu0 %vm2236_vm1, %v2235_v0  ;;  %v1477_v59 = vmul.f32 %v1424_v2, %v1285_v25 }
  0xac   :  { %2128 = vmatprep.mubr.msk.bf16.mxu1 %vm2236_vm1, %v2235_v0  ;;  %v1517_v0 = vrot.slane %v1506_v5, %v2656_v63  ;;  %v1271_v5 = vld [vmem:[#allocation2 + $0x5] sm:$0x1] }
  0xad   :  { %2119 = vmatpush3.bf16.msra.mxu0 %v2171_v31 }
  0xae   :  { %2127 = vmatpush3.bf16.msra.mxu1 %v2172_v27  ;;  %v1525_v44 = vcombine.high %v1517_v0, %v1517_v0  ;;  %v1533_v53 = vrot.slane %v1517_v0, %v2656_v63  ;;  %v1270_v0 = vld [vmem:[#allocation2 + $0x4] sm:$0x1] }
  0xb0   :  { %2121 = vmatmul.mubr.msk.bf16.vlgmr.msra.gmra.mrb[28].mxu0 %vm359_vm3, %v265_v34  ;;  %v1547_v39 = vrot.slane %v1525_v44, %v2656_v63  ;;  %v1611_v9 = vrot.slane %v1533_v53, %v2665_v55  ;;  %v1555_v24 = vcombine.high %v1533_v53, %v1533_v53  ;;  %v271_v34 = vld [vmem:[#allocation3 + $0x8] sm:$0x3] }
  0xb1   :  { %2129 = vmatmul.mubr.msk.bf16.vlgmr.msra.gmra.mrb[28].mxu1 %vm359_vm3, %v266_v35  ;;  %v272_v35 = vld [vmem:[#allocation3 + $0xa] sm:$0x3] }
  0xb2   :  { %v1615_v10 = vrot.slane %v1547_v39, %v2665_v55  ;;  %v1557_v29 = vcombine.high %v1547_v39, %v1547_v39 }
  0xb4   :  { %v1623_v40 = vrot.slane %v1557_v29, %v2665_v55 }
 0x14b   :  { %v397_v30 = vpop.f32.mrb[0].mxu0 }
 0x14c   :  { %v452_v26 = vpop.f32.mrb[0].mxu1  ;;  %v1228_v43 = vadd.f32 %v397_v30, %v267_v7  ;;  %v2010_v33 = vpop.f32.mrb[1].mxu0  ;;  %v1526_v7 = vcombine.high %v1524_v28, %v1524_v28 }
 0x14d   :  { %v1229_v38 = vadd.f32 %v452_v26, %v268_v15  ;;  %v2018_v46 = vpop.f32.mrb[1].mxu1  ;;  %v400_v47 = vpop.f32.mrb[2].mxu0  ;;  %v1619_v15 = vrot.slane %v1555_v24, %v2665_v55 }
 0x14e   :  { %v455_v48 = vpop.f32.mrb[2].mxu1  ;;  %1245 = vst.msk [vmem:[#allocation3] sm:$0x3] %vm61_vm0, %v1228_v43  ;;  %v2011_v49 = vpop.f32.mrb[3].mxu0  ;;  %v1287_v47 = vunpack.c.l.bf16 %v1271_v5 }
 0x14f   :  { %1246 = vst.msk [vmem:[#allocation3 + $0x2] sm:$0x3] %vm61_vm0, %v1229_v38  ;;  %v2019_v50 = vpop.f32.mrb[3].mxu1  ;;  %v1286_v48 = vunpack.c.l.bf16 %v1270_v0 }
 0x153   :  { %v507_v4 = vpop.f32.mrb[4].mxu0 }
 0x154   :  { %v562_v6 = vpop.f32.mrb[4].mxu1  ;;  %v1230_v11 = vadd.f32 %v507_v4, %v269_v56  ;;  %v2026_v45 = vpop.f32.mrb[5].mxu0 }
 0x155   :  { %v1231_v12 = vadd.f32 %v562_v6, %v270_v60  ;;  %v2034_v54 = vpop.f32.mrb[5].mxu1  ;;  %v1298_v13 = vld [vmem:[#allocation3] sm:$0x3]  ;;  %v510_v16 = vpop.f32.mrb[6].mxu0  ;;  %v1540_v60 = vrot.slane %v1524_v28, %v2656_v63  ;;  %v1273_v6 = vld [vmem:[#allocation2 + $0x7] sm:$0x1] }
 0x156   :  { %v1299_v14 = vld [vmem:[#allocation3 + $0x2] sm:$0x3]  ;;  %v565_v17 = vpop.f32.mrb[6].mxu1  ;;  %v1490_v18 = vadd.f32 %v1474_v62, %v1298_v13  ;;  %1247 = vst.msk [vmem:[#allocation3 + $0x4] sm:$0x3] %vm61_vm0, %v1230_v11  ;;  %v2027_v22 = vpop.f32.mrb[7].mxu0  ;;  %v1554_v62 = vrot.slane %v1526_v7, %v2656_v63 }
 0x157   :  { %v1491_v21 = vadd.f32 %v1475_v1, %v1299_v14  ;;  %1248 = vst.msk [vmem:[#allocation3 + $0x6] sm:$0x3] %vm61_vm0, %v1231_v12  ;;  %v2035_v23 = vpop.f32.mrb[7].mxu1  ;;  %v1428_v4 = vpop.permute.xlu0 %1427  ;;  %v1556_v8 = vcombine.high %v1540_v60, %v1540_v60  ;;  %v1272_v11 = vld [vmem:[#allocation2 + $0x6] sm:$0x1] }
 0x158   :  { %v2673_v31 = vadd.f32 %v1611_v9, %v1490_v18  ;;  %v1479_v9 = vmul.f32 %v1432_v61, %v1287_v47  ;;  %v273_v12 = vld [vmem:[#allocation3 + $0xc] sm:$0x3]  ;;  %v274_v45 = vld [vmem:[#allocation3 + $0xe] sm:$0x3]  ;;  %v1440_v17 = vpop.permute.xlu1 %1439  ;;  %v2702_v18 = vld [vmem:[%s2929_s2 + $0x8] sm:$0xff]  ;;  %v1558_v19 = vcombine.high %v1554_v62, %v1554_v62  ;;  %v1631_v22 = vrot.slane %v1554_v62, %v2665_v55 }
 0x159   :  { %v2675_v27 = vadd.f32 %v1615_v10, %v1491_v21  ;;  %v1478_v10 = vmul.f32 %v1428_v4, %v1286_v48  ;;  %v1627_v21 = vrot.slane %v1540_v60, %v2665_v55  ;;  %v1289_v23 = vunpack.c.l.bf16 %v1273_v6 }
 0x15a   :  { %v1704_v57 = vmul.f32 %v2673_v31, %v2673_v31  ;;  %v1288_v5 = vunpack.c.l.bf16 %v1272_v11 }
 0x15b   :  { %v1705_v58 = vmul.f32 %v2675_v27, %v2675_v27  ;;  %v617_v30 = vpop.f32.mrb[8].mxu0 }
 0x15c   :  { %v672_v26 = vpop.f32.mrb[8].mxu1  ;;  %v1720_v41 = vmul.f32 %v1704_v57, %v2673_v31  ;;  %v1232_v43 = vadd.f32 %v617_v30, %v271_v34  ;;  %v2042_v38 = vpop.f32.mrb[9].mxu0  ;;  %v2708_v34 = vld [vmem:[#allocation2 + $0x9] sm:$0x1] }
 0x15d   :  { %v1721_v32 = vmul.f32 %v1705_v58, %v2675_v27  ;;  %v1233_v20 = vadd.f32 %v672_v26, %v272_v35  ;;  %v2050_v33 = vpop.f32.mrb[9].mxu1  ;;  %v1300_v46 = vld [vmem:[#allocation3 + $0x4] sm:$0x3]  ;;  %v620_v49 = vpop.f32.mrb[10].mxu0  ;;  %v2710_v35 = vld [vmem:[#allocation2 + $0x8] sm:$0x1]  ;;  %v2716_v38 = vrot.slane %v1556_v8, %v2665_v55  ;;  %v1291_v60 = vunpack.c.l.bf16 %v2708_v34 }
 0x15e   :  { %v1301_v44 = vld [vmem:[#allocation3 + $0x6] sm:$0x3]  ;;  %v675_v50 = vpop.f32.mrb[10].mxu1  ;;  %v1736_v36 = vmul.f32 0.044715, %v1720_v41  ;;  %v1492_v52 = vadd.f32 %v1476_v37, %v1300_v46  ;;  %v2043_v39 = vpop.f32.mrb[11].mxu0  ;;  %v2719_v33 = vrot.slane %v1558_v19, %v2665_v55  ;;  %v1481_v46 = vmul.f32 %v1440_v17, %v1289_v23 }
 0x15f   :  { %v1737_v51 = vmul.f32 0.044715, %v1721_v32  ;;  %v1493_v53 = vadd.f32 %v1477_v59, %v1301_v44  ;;  %1249 = vst.msk [vmem:[#allocation3 + $0x8] sm:$0x3] %vm61_vm0, %v1232_v43  ;;  %1250 = vst.msk [vmem:[#allocation3 + $0xa] sm:$0x3] %vm61_vm0, %v1233_v20  ;;  %v1290_v62 = vunpack.c.l.bf16 %v2710_v35 }
 0x160   :  { %v2051_v56 = vpop.f32.mrb[11].mxu1  ;;  %v1752_v1 = vadd.f32 %v1736_v36, %v2673_v31  ;;  %v2691_v42 = vadd.f32 %v1619_v15, %v1492_v52  ;;  %v1277_v44 = vld [vmem:[#allocation2 + $0xb] sm:$0x1]  ;;  %v1436_v36 = vpop.permute.xlu0 %1435  ;;  %v2728_v52 = vld [vmem:[#allocation2 + $0xa] sm:$0x1] }
 0x161   :  { %v1753_v2 = vadd.f32 %v1737_v51, %v2675_v27  ;;  %v2693_v3 = vadd.f32 %v1623_v40, %v1493_v53  ;;  %v1566_v40 = vrot.slane %v2702_v18, %v2656_v63  ;;  %v1448_v51 = vpop.permute.xlu1 %1447  ;;  %v2730_v53 = vld [vmem:[#allocation2 + $0xd] sm:$0x1]  ;;  %v2732_v39 = vld [vmem:[#allocation2 + $0xc] sm:$0x1]  ;;  %v1480_v56 = vmul.f32 %v1436_v36, %v1288_v5 }
 0x162   :  { %v1768_v54 = vmul.f32 0.7978846, %v1752_v1  ;;  %v1706_v14 = vmul.f32 %v2691_v42, %v2691_v42  ;;  %v275_v1 = vld [vmem:[#allocation3 + $0x10] sm:$0x3]  ;;  %v1293_v11 = vunpack.c.l.bf16 %v1277_v44 }
 0x163   :  { %v1769_v13 = vmul.f32 0.7978846, %v1753_v2  ;;  %v1707_v16 = vmul.f32 %v2693_v3, %v2693_v3  ;;  %v727_v25 = vpop.f32.mrb[12].mxu0  ;;  %v1574_v2 = vcombine.high %v1566_v40, %v1566_v40 }
 0x164   :  { %v782_v28 = vpop.f32.mrb[12].mxu1  ;;  %2176 = vtanh.f32 %v1768_v54  ;;  %v1722_v24 = vmul.f32 %v1706_v14, %v2691_v42  ;;  %v1234_v57 = vadd.f32 %v727_v25, %v273_v12  ;;  %v2058_v37 = vpop.f32.mrb[13].mxu0  ;;  %v1292_v12 = vunpack.c.l.bf16 %v2728_v52 }
 0x165   :  { %v1723_v29 = vmul.f32 %v1707_v16, %v2693_v3  ;;  %v2066_v58 = vpop.f32.mrb[13].mxu1  ;;  %2178 = vtanh.f32 %v1769_v13  ;;  %v1235_v0 = vadd.f32 %v782_v28, %v274_v45  ;;  %v730_v7 = vpop.f32.mrb[14].mxu0  ;;  %v1295_v45 = vunpack.c.l.bf16 %v2730_v53 }
 0x166   :  { %v1302_v59 = vld [vmem:[#allocation3 + $0x8] sm:$0x3]  ;;  %v1303_v61 = vld [vmem:[#allocation3 + $0xa] sm:$0x3]  ;;  %v785_v15 = vpop.f32.mrb[14].mxu1  ;;  %v2059_v43 = vpop.f32.mrb[15].mxu0  ;;  %v1294_v54 = vunpack.c.l.bf16 %v2732_v39  ;;  %v2746_v25 = vrot.slane %v1566_v40, %v2656_v63  ;;  %v1483_v58 = vmul.f32 %v1448_v51, %v1291_v60 }
 0x167   :  { %v1738_v30 = vmul.f32 0.044715, %v1722_v24  ;;  %v1739_v26 = vmul.f32 0.044715, %v1723_v29  ;;  %v1494_v41 = vadd.f32 %v1478_v10, %v1302_v59  ;;  %v1495_v32 = vadd.f32 %v1479_v9, %v1303_v61  ;;  %1251 = vst.msk [vmem:[#allocation3 + $0xc] sm:$0x3] %vm61_vm0, %v1234_v57  ;;  %v1444_v59 = vpop.permute.xlu0 %1443 }
 0x168   :  { %v2067_v20 = vpop.f32.mrb[15].mxu1  ;;  %1252 = vst.msk [vmem:[#allocation3 + $0xe] sm:$0x3] %vm61_vm0, %v1235_v0  ;;  %v276_v10 = vld [vmem:[#allocation3 + $0x12] sm:$0x3]  ;;  %v2749_v24 = vrot.slane %v1574_v2, %v2656_v63  ;;  %v1456_v0 = vpop.permute.xlu1 %1455  ;;  %v1482_v40 = vmul.f32 %v1444_v59, %v1290_v62 }
 0x169   :  { %v1754_v47 = vadd.f32 %v1738_v30, %v2691_v42  ;;  %v1755_v48 = vadd.f32 %v1739_v26, %v2693_v3  ;;  %v2724_v49 = vadd.f32 %v1627_v21, %v1494_v41  ;;  %v2726_v50 = vadd.f32 %v1631_v22, %v1495_v32  ;;  %v278_v60 = vld [vmem:[#allocation3 + $0x16] sm:$0x3] }
 0x16a   :  { %v2752_v26 = vmul.f32 %v1456_v0, %v1293_v11  ;;  %v1647_v51 = vrot.slane %v2749_v24, %v2665_v55 }
 0x16b   :  { %v1770_v4 = vmul.f32 0.7978846, %v1754_v47  ;;  %v1771_v6 = vmul.f32 0.7978846, %v1755_v48  ;;  %v1708_v8 = vmul.f32 %v2724_v49, %v2724_v49  ;;  %v1709_v9 = vmul.f32 %v2726_v50, %v2726_v50  ;;  %v837_v13 = vpop.f32.mrb[16].mxu0  ;;  %v1452_v0 = vpop.permute.xlu0 %1451 }
 0x16c   :  { %v892_v14 = vpop.f32.mrb[16].mxu1  ;;  %v1236_v19 = vadd.f32 %v837_v13, %v275_v1  ;;  %v2074_v21 = vpop.f32.mrb[17].mxu0 }
 0x16d   :  { %2180 = vtanh.f32 %v1770_v4  ;;  %v1724_v16 = vmul.f32 %v1708_v8, %v2724_v49  ;;  %v1725_v17 = vmul.f32 %v1709_v9, %v2726_v50  ;;  %v2082_v22 = vpop.f32.mrb[17].mxu1  ;;  %v1237_v28 = vadd.f32 %v892_v14, %v276_v10  ;;  %v840_v29 = vpop.f32.mrb[18].mxu0 }
 0x16e   :  { %2182 = vtanh.f32 %v1771_v6  ;;  %v1304_v23 = vld [vmem:[#allocation3 + $0xc] sm:$0x3]  ;;  %v895_v34 = vpop.f32.mrb[18].mxu1  ;;  %v2177_v35 = vpop.eup %2176  ;;  %1253 = vst.msk [vmem:[#allocation3 + $0x10] sm:$0x3] %vm61_vm0, %v1236_v19  ;;  %v1604_v8 = vcombine.high %v2746_v25, %v2746_v25  ;;  %v1559_v10 = vcombine.high %v2702_v18, %v2702_v18 }
 0x16f   :  { %v1740_v57 = vmul.f32 0.044715, %v1724_v16  ;;  %v1741_v37 = vmul.f32 0.044715, %v1725_v17  ;;  %v1496_v61 = vadd.f32 %v1480_v56, %v1304_v23  ;;  %v1305_v5 = vld [vmem:[#allocation3 + $0xe] sm:$0x3]  ;;  %v2179_v7 = vpop.eup %2178 }
 0x170   :  { %v1800_v15 = vadd.f32 1.0, %v2177_v35  ;;  %v1497_v30 = vadd.f32 %v1481_v46, %v1305_v5  ;;  %1254 = vst.msk [vmem:[#allocation3 + $0x12] sm:$0x3] %vm61_vm0, %v1237_v28  ;;  %v2075_v41 = vpop.f32.mrb[19].mxu0  ;;  %v2083_v32 = vpop.f32.mrb[19].mxu1  ;;  %v1801_v43 = vadd.f32 1.0, %v2179_v7  ;;  %v1643_v46 = vrot.slane %v2746_v25, %v2665_v55 }
 0x171   :  { %v1756_v20 = vadd.f32 %v1740_v57, %v2724_v49  ;;  %v1757_v44 = vadd.f32 %v1741_v37, %v2726_v50  ;;  %v2758_v47 = vadd.f32 %v2716_v38, %v1496_v61  ;;  %v277_v56 = vld [vmem:[#allocation3 + $0x14] sm:$0x3] }
 0x172   :  { %v1816_v48 = vmul.f32 0.5, %v1800_v15  ;;  %v2761_v36 = vadd.f32 %v2719_v33, %v1497_v30  ;;  %v1817_v62 = vmul.f32 0.5, %v1801_v43  ;;  %v1573_v15 = vrot.slane %v1559_v10, %v2656_v63 }
 0x173   :  { %v1772_v1 = vmul.f32 0.7978846, %v1756_v20  ;;  %v1773_v2 = vmul.f32 0.7978846, %v1757_v44  ;;  %v1710_v4 = vmul.f32 %v2758_v47, %v2758_v47  ;;  %v947_v6 = vpop.f32.mrb[20].mxu0  ;;  %v1484_v30 = vmul.f32 %v1452_v0, %v1292_v12 }
 0x174   :  { %v1832_v38 = vmul.f32 %v1816_v48, %v2673_v31  ;;  %v1711_v33 = vmul.f32 %v2761_v36, %v2761_v36  ;;  %v1002_v9 = vpop.f32.mrb[20].mxu1  ;;  %v1833_v11 = vmul.f32 %v1817_v62, %v2675_v27  ;;  %v1238_v14 = vadd.f32 %v947_v6, %v277_v56  ;;  %v2090_v16 = vpop.f32.mrb[21].mxu0  ;;  %v279_v44 = vld [vmem:[#allocation3 + $0x18] sm:$0x3] }
 0x175   :  { %2184 = vtanh.f32 %v1772_v1  ;;  %v1726_v13 = vmul.f32 %v1710_v4, %v2758_v47  ;;  %v2098_v17 = vpop.f32.mrb[21].mxu1  ;;  %v1306_v21 = vld [vmem:[#allocation3 + $0x10] sm:$0x3]  ;;  %v1239_v22 = vadd.f32 %v1002_v9, %v278_v60  ;;  %v950_v23 = vpop.f32.mrb[22].mxu0  ;;  %v1606_v27 = vcombine.high %v2749_v24, %v2749_v24  ;;  %v280_v1 = vld [vmem:[#allocation3 + $0x1a] sm:$0x3] }
 0x176   :  { %v1848_v31 = vpack.c.bf16 %v1832_v38, %v1832_v38  ;;  %2186 = vtanh.f32 %v1773_v2  ;;  %v1727_v19 = vmul.f32 %v1711_v33, %v2761_v36  ;;  %v1005_v25 = vpop.f32.mrb[22].mxu1  ;;  %v1849_v29 = vpack.c.bf16 %v1833_v11, %v1833_v11  ;;  %1255 = vst.msk [vmem:[#allocation3 + $0x14] sm:$0x3] %vm61_vm0, %v1238_v14  ;;  %v2091_v57 = vpop.f32.mrb[23].mxu0 }
 0x177   :  { %v2181_v28 = vpop.eup %2180  ;;  %v1742_v34 = vmul.f32 0.044715, %v1726_v13  ;;  %v1498_v18 = vadd.f32 %v1482_v40, %v1306_v21  ;;  %v1307_v35 = vld [vmem:[#allocation3 + $0x12] sm:$0x3]  ;;  %v2099_v37 = vpop.f32.mrb[23].mxu1  ;;  %v1651_v20 = vrot.slane %v1604_v8, %v2665_v55  ;;  %v1655_v62 = vrot.slane %v1606_v27, %v2665_v55 }
 0x178   :  { %v2183_v59 = vpop.eup %2182  ;;  %1865 = vst.msk [vmem:[%s2931_s4] sm:$0x1] %vm232_vm2, %v1848_v31  ;;  %v1802_v61 = vadd.f32 1.0, %v2181_v28  ;;  %v1743_v5 = vmul.f32 0.044715, %v1727_v19  ;;  %v1499_v7 = vadd.f32 %v1483_v58, %v1307_v35  ;;  %v1575_v4 = vcombine.high %v1573_v15, %v1573_v15 }
 0x179   :  { %1256 = vst.msk [vmem:[#allocation3 + $0x16] sm:$0x3] %vm61_vm0, %v1239_v22  ;;  %v1803_v24 = vadd.f32 1.0, %v2183_v59  ;;  %v1758_v40 = vadd.f32 %v1742_v34, %v2758_v47  ;;  %v2795_v41 = vadd.f32 %v1643_v46, %v1498_v18  ;;  %v1464_v34 = vpop.permute.xlu1 %1463  ;;  %v1460_v59 = vpop.permute.xlu0 %1459 }
 0x17a   :  { %1866 = vst.msk [vmem:[%s2931_s4 + $0x1] sm:$0x1] %vm232_vm2, %v1849_v29  ;;  %v1818_v32 = vmul.f32 0.5, %v1802_v61  ;;  %v1759_v58 = vadd.f32 %v1743_v5, %v2761_v36  ;;  %v2798_v43 = vadd.f32 %v1647_v51, %v1499_v7  ;;  %v2821_v27 = vrot.slane %v1575_v4, %v2656_v63 }
 0x17b   :  { %v1819_v48 = vmul.f32 0.5, %v1803_v24  ;;  %v1774_v56 = vmul.f32 0.7978846, %v1758_v40  ;;  %v1712_v60 = vmul.f32 %v2795_v41, %v2795_v41  ;;  %v1057_v2 = vpop.f32.mrb[24].mxu0  ;;  %v1487_v37 = vmul.f32 %v1464_v34, %v1295_v45 }
 0x17c   :  { %v1834_v52 = vmul.f32 %v1818_v32, %v2691_v42  ;;  %v1775_v12 = vmul.f32 0.7978846, %v1759_v58  ;;  %v1713_v46 = vmul.f32 %v2798_v43, %v2798_v43  ;;  %v1112_v51 = vpop.f32.mrb[24].mxu1  ;;  %v1240_v6 = vadd.f32 %v1057_v2, %v279_v44  ;;  %v2106_v8 = vpop.f32.mrb[25].mxu0 }
 0x17d   :  { %v1835_v38 = vmul.f32 %v1819_v48, %v2693_v3  ;;  %2188 = vtanh.f32 %v1774_v56  ;;  %v1728_v33 = vmul.f32 %v1712_v60, %v2795_v41  ;;  %v2114_v9 = vpop.f32.mrb[25].mxu1  ;;  %v1308_v42 = vld [vmem:[#allocation3 + $0x14] sm:$0x3]  ;;  %v1241_v13 = vadd.f32 %v1112_v51, %v280_v1  ;;  %v1060_v14 = vpop.f32.mrb[26].mxu0  ;;  %v1280_v60 = vld [vmem:[#allocation2 + $0xe] sm:$0x1] }
 0x17e   :  { %v1850_v10 = vpack.c.bf16 %v1834_v52, %v1834_v52  ;;  %2190 = vtanh.f32 %v1775_v12  ;;  %v1729_v11 = vmul.f32 %v1713_v46, %v2798_v43  ;;  %v1115_v16 = vpop.f32.mrb[26].mxu1  ;;  %v1500_v21 = vadd.f32 %v1484_v30, %v1308_v42  ;;  %1257 = vst.msk [vmem:[#allocation3 + $0x18] sm:$0x3] %vm61_vm0, %v1240_v6  ;;  %v2107_v23 = vpop.f32.mrb[27].mxu0  ;;  %v282_v30 = vld [vmem:[#allocation3 + $0x1e] sm:$0x3] }
 0x17f   :  { %v2185_v17 = vpop.eup %2184  ;;  %v1851_v31 = vpack.c.bf16 %v1835_v38, %v1835_v38  ;;  %v1744_v19 = vmul.f32 0.044715, %v1728_v33  ;;  %v2812_v3 = vrot.slane %v1573_v15, %v2656_v63  ;;  %v2115_v25 = vpop.f32.mrb[27].mxu1  ;;  %1258 = vst.msk [vmem:[#allocation3 + $0x1a] sm:$0x3] %vm61_vm0, %v1241_v13  ;;  %v1486_v0 = vmul.f32 %v1460_v59, %v1294_v54 }
 0x180   :  { %v1309_v22 = vld [vmem:[#allocation3 + $0x16] sm:$0x3]  ;;  %v2187_v28 = vpop.eup %2186  ;;  %1867 = vst.msk [vmem:[%s2931_s4 + $0x2] sm:$0x1] %vm232_vm2, %v1850_v10  ;;  %v1804_v29 = vadd.f32 1.0, %v2185_v17  ;;  %v2830_v5 = vadd.f32 %v1651_v20, %v1500_v21  ;;  %v1663_v54 = vrot.slane %v2821_v27, %v2665_v55  ;;  %v1472_v16 = vpop.permute.xlu1 %1471  ;;  %v1296_v17 = vunpack.c.l.bf16 %v1280_v60 }
 0x181   :  { %v1745_v18 = vmul.f32 0.044715, %v1729_v11  ;;  %v1501_v35 = vadd.f32 %v2752_v26, %v1309_v22  ;;  %1868 = vst.msk [vmem:[%s2931_s4 + $0x3] sm:$0x1] %vm232_vm2, %v1851_v31  ;;  %v1805_v57 = vadd.f32 1.0, %v2187_v28  ;;  %v1760_v61 = vadd.f32 %v1744_v19, %v2795_v41  ;;  %v1468_v22 = vpop.permute.xlu0 %1467 }
 0x182   :  { %v1820_v26 = vmul.f32 0.5, %v1804_v29  ;;  %v281_v15 = vld [vmem:[#allocation3 + $0x1c] sm:$0x3]  ;;  %v1714_v53 = vmul.f32 %v2830_v5, %v2830_v5  ;;  %v1659_v45 = vrot.slane %v2812_v3, %v2665_v55  ;;  %v1281_v20 = vld [vmem:[#allocation2 + $0xf] sm:$0x1]  ;;  %v1605_v28 = vcombine.high %v2812_v3, %v2812_v3 }
 0x183   :  { %v1761_v63 = vadd.f32 %v1745_v18, %v2798_v43  ;;  %v2835_v7 = vadd.f32 %v1655_v62, %v1501_v35  ;;  %v1821_v24 = vmul.f32 0.5, %v1805_v57  ;;  %v1776_v40 = vmul.f32 0.7978846, %v1760_v61  ;;  %v1167_v44 = vpop.f32.mrb[28].mxu0 }
 0x184   :  { %v1836_v32 = vmul.f32 %v1820_v26, %v2724_v49  ;;  %v1222_v48 = vpop.f32.mrb[28].mxu1  ;;  %v1730_v62 = vmul.f32 %v1714_v53, %v2830_v5  ;;  %v1242_v1 = vadd.f32 %v1167_v44, %v281_v15  ;;  %v2122_v52 = vpop.f32.mrb[29].mxu0  ;;  %v1297_v8 = vunpack.c.l.bf16 %v1281_v20 }
 0x185   :  { %v1777_v58 = vmul.f32 0.7978846, %v1761_v63  ;;  %v1715_v39 = vmul.f32 %v2835_v7, %v2835_v7  ;;  %v1837_v56 = vmul.f32 %v1821_v24, %v2726_v50  ;;  %2192 = vtanh.f32 %v1776_v40  ;;  %v2130_v12 = vpop.f32.mrb[29].mxu1  ;;  %v1310_v2 = vld [vmem:[#allocation3 + $0x18] sm:$0x3]  ;;  %v1170_v4 = vpop.f32.mrb[30].mxu0 }
 0x186   :  { %v1852_v49 = vpack.c.bf16 %v1836_v32, %v1836_v32  ;;  %v1243_v51 = vadd.f32 %v1222_v48, %v282_v30  ;;  %v1225_v38 = vpop.f32.mrb[30].mxu1  ;;  %v1746_v9 = vmul.f32 0.044715, %v1730_v62  ;;  %v1502_v50 = vadd.f32 %v1486_v0, %v1310_v2  ;;  %v1311_v10 = vld [vmem:[#allocation3 + $0x1a] sm:$0x3]  ;;  %v2123_v11 = vpop.f32.mrb[31].mxu0 }
 0x187   :  { %2194 = vtanh.f32 %v1777_v58  ;;  %v1731_v46 = vmul.f32 %v1715_v39, %v2835_v7  ;;  %v2189_v33 = vpop.eup %2188  ;;  %v1853_v6 = vpack.c.bf16 %v1837_v56, %v1837_v56  ;;  %1259 = vst.msk [vmem:[#allocation3 + $0x1c] sm:$0x3] %vm61_vm0, %v1242_v1  ;;  %v2131_v42 = vpop.f32.mrb[31].mxu1  ;;  %v1503_v19 = vadd.f32 %v1487_v37, %v1311_v10 }
 0x188   :  { %v2191_v13 = vpop.eup %2190  ;;  %1869 = vst.msk [vmem:[%s2931_s4 + $0x4] sm:$0x1] %vm232_vm2, %v1852_v49  ;;  %v1806_v14 = vadd.f32 1.0, %v2189_v33  ;;  %v1762_v23 = vadd.f32 %v1746_v9, %v2830_v5  ;;  %v2860_v25 = vadd.f32 %v1659_v45, %v1502_v50  ;;  %v1607_v35 = vcombine.high %v2821_v27, %v2821_v27 }
 0x189   :  { %v1747_v31 = vmul.f32 0.044715, %v1731_v46  ;;  %1260 = vst.msk [vmem:[#allocation3 + $0x1e] sm:$0x3] %vm61_vm0, %v1243_v51  ;;  %v1807_v21 = vadd.f32 1.0, %v2191_v13  ;;  %v2865_v18 = vadd.f32 %v1663_v54, %v1503_v19  ;;  %v1489_v37 = vmul.f32 %v1472_v16, %v1297_v8 }
 0x18a   :  { %1870 = vst.msk [vmem:[%s2931_s4 + $0x5] sm:$0x1] %vm232_vm2, %v1853_v6  ;;  %v1822_v29 = vmul.f32 0.5, %v1806_v14  ;;  %v1778_v59 = vmul.f32 0.7978846, %v1762_v23  ;;  %v1716_v61 = vmul.f32 %v2860_v25, %v2860_v25  ;;  %v1488_v0 = vmul.f32 %v1468_v22, %v1296_v17 }
 0x18b   :  { %v1763_v34 = vadd.f32 %v1747_v31, %v2835_v7  ;;  %v1823_v57 = vmul.f32 0.5, %v1807_v21  ;;  %v1717_v3 = vmul.f32 %v2865_v18, %v2865_v18  ;;  %v1667_v27 = vrot.slane %v1605_v28, %v2665_v55 }
 0x18c   :  { %v1838_v26 = vmul.f32 %v1822_v29, %v2758_v47  ;;  %2196 = vtanh.f32 %v1778_v59  ;;  %v1732_v24 = vmul.f32 %v1716_v61, %v2860_v25  ;;  %v1671_v30 = vrot.slane %v1607_v35, %v2665_v55 }
 0x18d   :  { %v1779_v63 = vmul.f32 0.7978846, %v1763_v34  ;;  %v1839_v15 = vmul.f32 %v1823_v57, %v2761_v36  ;;  %v1733_v53 = vmul.f32 %v1717_v3, %v2865_v18 }
 0x18e   :  { %v1854_v40 = vpack.c.bf16 %v1838_v26, %v1838_v26  ;;  %v1312_v45 = vld [vmem:[#allocation3 + $0x1c] sm:$0x3]  ;;  %v1748_v58 = vmul.f32 0.044715, %v1732_v24 }
 0x18f   :  { %2198 = vtanh.f32 %v1779_v63  ;;  %v2193_v47 = vpop.eup %2192  ;;  %v1855_v32 = vpack.c.bf16 %v1839_v15, %v1839_v15  ;;  %v1504_v20 = vadd.f32 %v1488_v0, %v1312_v45  ;;  %v1749_v44 = vmul.f32 0.044715, %v1733_v53 }
 0x190   :  { %v1313_v39 = vld [vmem:[#allocation3 + $0x1e] sm:$0x3]  ;;  %1871 = vst.msk [vmem:[%s2931_s4 + $0x6] sm:$0x1] %vm232_vm2, %v1854_v40  ;;  %v1808_v36 = vadd.f32 1.0, %v2193_v47  ;;  %v1764_v56 = vadd.f32 %v1748_v58, %v2860_v25 }
 0x191   :  { %v2195_v54 = vpop.eup %2194  ;;  %v1505_v48 = vadd.f32 %v1489_v37, %v1313_v39  ;;  %1872 = vst.msk [vmem:[%s2931_s4 + $0x7] sm:$0x1] %vm232_vm2, %v1855_v32  ;;  %v1702_v60 = vadd.f32 %v1667_v27, %v1504_v20  ;;  %v1765_v1 = vadd.f32 %v1749_v44, %v2865_v18 }
 0x192   :  { %v1809_v55 = vadd.f32 1.0, %v2195_v54  ;;  %v1824_v62 = vmul.f32 0.5, %v1808_v36  ;;  %v1780_v49 = vmul.f32 0.7978846, %v1764_v56 }
 0x193   :  { %v1703_v52 = vadd.f32 %v1671_v30, %v1505_v48  ;;  %v1718_v46 = vmul.f32 %v1702_v60, %v1702_v60  ;;  %v1781_v51 = vmul.f32 0.7978846, %v1765_v1 }
 0x194   :  { %v1825_v12 = vmul.f32 0.5, %v1809_v55  ;;  %v1840_v2 = vmul.f32 %v1824_v62, %v2795_v41  ;;  %2200 = vtanh.f32 %v1780_v49 }
 0x195   :  { %v1719_v4 = vmul.f32 %v1703_v52, %v1703_v52  ;;  %v1734_v33 = vmul.f32 %v1718_v46, %v1702_v60  ;;  %2202 = vtanh.f32 %v1781_v51 }
 0x196   :  { %v1841_v38 = vmul.f32 %v1825_v12, %v2798_v43  ;;  %v1856_v6 = vpack.c.bf16 %v1840_v2, %v1840_v2  ;;  %v2197_v9 = vpop.eup %2196 }
 0x197   :  { %v1735_v8 = vmul.f32 %v1719_v4, %v1703_v52  ;;  %v1750_v10 = vmul.f32 0.044715, %v1734_v33  ;;  %v1810_v42 = vadd.f32 1.0, %v2197_v9 }
 0x198   :  { %v1857_v50 = vpack.c.bf16 %v1841_v38, %v1841_v38  ;;  %1873 = vst.msk [vmem:[%s2931_s4 + $0x8] sm:$0x1] %vm232_vm2, %v1856_v6 }
 0x199   :  { %v2199_v11 = vpop.eup %2198  ;;  %v1751_v41 = vmul.f32 0.044715, %v1735_v8  ;;  %v1766_v13 = vadd.f32 %v1750_v10, %v1702_v60  ;;  %v1826_v14 = vmul.f32 0.5, %v1810_v42 }
 0x19a   :  { %1874 = vst.msk [vmem:[%s2931_s4 + $0x9] sm:$0x1] %vm232_vm2, %v1857_v50  ;;  %v1811_v43 = vadd.f32 1.0, %v2199_v11 }
 0x19b   :  { %v1767_v16 = vadd.f32 %v1751_v41, %v1703_v52  ;;  %v1782_v31 = vmul.f32 0.7978846, %v1766_v13  ;;  %v1842_v19 = vmul.f32 %v1826_v14, %v2830_v5 }
 0x19c   :  { %v1827_v17 = vmul.f32 0.5, %v1811_v43 }
 0x19d   :  { %v1783_v21 = vmul.f32 0.7978846, %v1767_v16  ;;  %2204 = vtanh.f32 %v1782_v31  ;;  %v1858_v23 = vpack.c.bf16 %v1842_v19, %v1842_v19 }
 0x19e   :  { %v1843_v22 = vmul.f32 %v1827_v17, %v2835_v7  ;;  %v2201_v28 = vpop.eup %2200 }
 0x19f   :  { %2206 = vtanh.f32 %v1783_v21  ;;  %v2203_v34 = vpop.eup %2202  ;;  %1875 = vst.msk [vmem:[%s2931_s4 + $0xa] sm:$0x1] %vm232_vm2, %v1858_v23  ;;  %v1812_v35 = vadd.f32 1.0, %v2201_v28 }
 0x1a0   :  { %v1859_v29 = vpack.c.bf16 %v1843_v22, %v1843_v22  ;;  %v1813_v5 = vadd.f32 1.0, %v2203_v34 }
 0x1a1   :  { %v1828_v57 = vmul.f32 0.5, %v1812_v35 }
 0x1a2   :  { %1876 = vst.msk [vmem:[%s2931_s4 + $0xb] sm:$0x1] %vm232_vm2, %v1859_v29  ;;  %v1829_v7 = vmul.f32 0.5, %v1813_v5 }
 0x1a3   :  { %v1844_v37 = vmul.f32 %v1828_v57, %v2860_v25 }
 0x1a4   :  { %v1845_v59 = vmul.f32 %v1829_v7, %v2865_v18 }
 0x1a5   :  { %v1860_v61 = vpack.c.bf16 %v1844_v37, %v1844_v37 }
 0x1a6   :  { %v1861_v0 = vpack.c.bf16 %v1845_v59, %v1845_v59 }
 0x1a7   :  { %v2205_v26 = vpop.eup %2204  ;;  %1877 = vst.msk [vmem:[%s2931_s4 + $0xc] sm:$0x1] %vm232_vm2, %v1860_v61 }
 0x1a8   :  { %v1814_v3 = vadd.f32 1.0, %v2205_v26  ;;  %1878 = vst.msk [vmem:[%s2931_s4 + $0xd] sm:$0x1] %vm232_vm2, %v1861_v0 }
 0x1a9   :  { %v2207_v63 = vpop.eup %2206 }
 0x1aa   :  { %v1815_v15 = vadd.f32 1.0, %v2207_v63  ;;  %v1830_v24 = vmul.f32 0.5, %v1814_v3 }
 0x1ac   :  { %v1831_v25 = vmul.f32 0.5, %v1815_v15  ;;  %v1846_v27 = vmul.f32 %v1830_v24, %v1702_v60 }
 0x1ae   :  { %v1847_v18 = vmul.f32 %v1831_v25, %v1703_v52  ;;  %v1862_v40 = vpack.c.bf16 %v1846_v27, %v1846_v27 }
 0x1b0   :  { %v1863_v53 = vpack.c.bf16 %v1847_v18, %v1847_v18  ;;  %1879 = vst.msk [vmem:[%s2931_s4 + $0xe] sm:$0x1] %vm232_vm2, %v1862_v40 }
 0x1b2   :  { %1880 = vst.msk [vmem:[%s2931_s4 + $0xf] sm:$0x1] %vm232_vm2, %v1863_v53 }
 0x1b3   :  { %1885 = vsyncpa [#allocation5], 1 }

</bundles_post_ra>
